<compile_context>
chip_gen: v7x
topology: tpu7x:2x2x1
jax: 0.10.0
libtpu: 0.0.40
codegen_flags: <defaults>
</compile_context>

<pallas_src>
import math
from functools import partial

import jax
import jax.numpy as jnp
from jax.experimental import pallas as pl
from jax.experimental.pallas import tpu as pltpu


def _round_up(x, m):
    return ((x + m - 1) // m) * m


VMEM_LIMIT = 40 * 1024 * 1024          # <= 64 MiB physical on v7x, plenty of headroom on v5e/v6e
_WEIGHT_TILE_BYTES = 4 * 1024 * 1024   # ceiling for one streamed bf16 weight tile


# ---------------------------------------------------------------------------
# Tile-size policies
# ---------------------------------------------------------------------------

def _pick_tm(M, cap=1024):
    """Row tile.  Prefer a large exact divisor of M; otherwise rely on ragged grids."""
    if M <= cap:
        return _round_up(M, 8)
    for cand in range(cap, 255, -8):
        if M % cand == 0:
            return cand
    return 512


def _pick_tn(N):
    """Output-column tile: true N for skinny layers (no padded lanes written to HBM)."""
    if N < 128:
        return N, N
    if N % 128 == 0:
        for t in (512, 256, 128):
            if N % t == 0:
                return t, N
    return 128, _round_up(N, 128)      # not exercised by this network


def _pick_tk(K, tn):
    """Contraction tile.  Single full-K step (no K padding) whenever the weight tile
    fits the per-buffer budget; otherwise a 128-multiple that divides padded K."""
    lane_n = max(_round_up(tn, 128), 128)
    if K * lane_n * 2 <= _WEIGHT_TILE_BYTES:
        return K, K
    Kp = _round_up(K, 128)
    best = 128
    for t in range(128, Kp + 1, 128):
        if Kp % t == 0 and t * lane_n * 2 <= _WEIGHT_TILE_BYTES:
            best = t
    return best, Kp


# ---------------------------------------------------------------------------
# Pallas kernels: matmul (+ fused bias / ReLU / residual epilogues)
# ---------------------------------------------------------------------------

def _mm_kernel(a_ref, b_ref, bias_ref, o_ref, acc_ref, *, apply_relu):
    """bf16 x bf16 matmul, f32 accumulator, fused bias (+ReLU), bf16 output."""
    @pl.when(pl.program_id(2) == 0)
    def _():
        acc_ref[...] = jnp.zeros_like(acc_ref)

    acc_ref[...] += jnp.dot(a_ref[...], b_ref[...],
                            preferred_element_type=jnp.float32)

    @pl.when(pl.program_id(2) == pl.num_programs(2) - 1)
    def _():
        r = acc_ref[...] + bias_ref[...]
        if apply_relu:
            r = jnp.maximum(r, 0.0)
        o_ref[...] = r.astype(o_ref.dtype)


def _mm_res_kernel(a_ref, b_ref, bias_ref, res_ref, o_ref, acc_ref):
    """Same matmul with the bottleneck residual add + ReLU fused into the epilogue.
    Residual stream stays bf16 in HBM; only widened here."""
    @pl.when(pl.program_id(2) == 0)
    def _():
        acc_ref[...] = jnp.zeros_like(acc_ref)

    acc_ref[...] += jnp.dot(a_ref[...], b_ref[...],
                            preferred_element_type=jnp.float32)

    @pl.when(pl.program_id(2) == pl.num_programs(2) - 1)
    def _():
        r = acc_ref[...] + bias_ref[...] + res_ref[...].astype(jnp.float32)
        o_ref[...] = jnp.maximum(r, 0.0).astype(o_ref.dtype)


def pallas_matmul_prepped(a, cp, residual=None):
    """a: (M, K) any float dtype.  cp: prepared weight dict.  Returns (M, N) bf16."""
    M, Ka = a.shape
    K, N, Kp, Np = cp['K'], cp['N'], cp['Kp'], cp['Np']
    tk, tn = cp['tk'], cp['tn']
    assert Ka == K, (Ka, K)

    a = a.astype(jnp.bfloat16)
    if Kp > K:                       # only tiny FC activation rows ever hit this branch
        a = jnp.pad(a, ((0, 0), (0, Kp - K)))

    tm = _pick_tm(M)
    grid = (-(-M // tm), Np // tn, Kp // tk)   # ragged M handled by Pallas boundary masking

    a_spec = pl.BlockSpec((tm, tk), lambda i, j, k: (i, k))
    b_spec = pl.BlockSpec((tk, tn), lambda i, j, k: (k, j))
    bias_spec = pl.BlockSpec((1, tn), lambda i, j, k: (0, j))
    o_spec = pl.BlockSpec((tm, tn), lambda i, j, k: (i, j))
    cparams = pltpu.CompilerParams(
        dimension_semantics=("parallel", "parallel", "arbitrary"),
        vmem_limit_bytes=VMEM_LIMIT)

    if residual is None:
        out = pl.pallas_call(
            partial(_mm_kernel, apply_relu=cp['relu']),
            out_shape=jax.ShapeDtypeStruct((M, Np), jnp.bfloat16),
            grid_spec=pltpu.PrefetchScalarGridSpec(
                num_scalar_prefetch=0, grid=grid,
                in_specs=[a_spec, b_spec, bias_spec],
                out_specs=o_spec,
                scratch_shapes=[pltpu.VMEM((tm, tn), jnp.float32)]),
            compiler_params=cparams,
        )(a, cp['w'], cp['b'])
    else:
        assert Np == N and residual.shape == (M, N), (residual.shape, M, N)
        res = residual.astype(jnp.bfloat16)
        res_spec = pl.BlockSpec((tm, tn), lambda i, j, k: (i, j))
        out = pl.pallas_call(
            _mm_res_kernel,
            out_shape=jax.ShapeDtypeStruct((M, Np), jnp.bfloat16),
            grid_spec=pltpu.PrefetchScalarGridSpec(
                num_scalar_prefetch=0, grid=grid,
                in_specs=[a_spec, b_spec, bias_spec, res_spec],
                out_specs=o_spec,
                scratch_shapes=[pltpu.VMEM((tm, tn), jnp.float32)]),
            compiler_params=cparams,
        )(a, cp['w'], cp['b'], res)

    if Np != N:
        out = out[:, :N]
    return out


# ---------------------------------------------------------------------------
# Conv2d, path 1: channels-last im2col + Pallas matmul
# (used for 1x1 convs, stride-2 convs and the tiny-Cin STN convs)
# ---------------------------------------------------------------------------

def conv2d_nhwc(x, cp, residual=None):
    """x: (B, H, W, Cin).  Returns (B, OH, OW, Cout) bf16."""
    B, H, W, Cin = x.shape
    kh, kw, stride, padding = cp['kh'], cp['kw'], cp['stride'], cp['pad']
    xb = x.astype(jnp.bfloat16)
    if padding:
        xb = jnp.pad(xb, ((0, 0), (padding, padding), (padding, padding), (0, 0)))
    Hp, Wp = H + 2 * padding, W + 2 * padding
    OH = (Hp - kh) // stride + 1
    OW = (Wp - kw) // stride + 1

    if kh == 1 and kw == 1:
        a = xb[:, ::stride, ::stride, :] if stride > 1 else xb
        a = a.reshape(B * OH * OW, Cin)
    else:
        wins = [xb[:, i:i + stride * (OH - 1) + 1:stride,
                   j:j + stride * (OW - 1) + 1:stride, :]
                for i in range(kh) for j in range(kw)]
        a = jnp.concatenate(wins, axis=-1).reshape(B * OH * OW, kh * kw * Cin)

    out = pallas_matmul_prepped(a, cp, residual=residual)
    return out.reshape(B, OH, OW, cp['N'])


# ---------------------------------------------------------------------------
# Conv2d, path 2: in-kernel "tap" conv for stride-1 3x3 ResNet convs.
# The padded image is read once per batch element; the 9 kernel taps are
# accumulated as shifted matmuls on a flattened (row*col, Cin) view in VMEM,
# so no im2col patch matrix ever touches HBM.
# ---------------------------------------------------------------------------

def _tap_conv_kernel(x_ref, w_ref, b_ref, o_ref, *, OH, OW, Wp, taps, relu):
    cout = o_ref.shape[-1]
    m = OH * Wp
    acc = jnp.zeros((m, cout), jnp.float32)
    t = 0
    for di, dj in taps:
        off = di * Wp + dj                      # flat-offset trick on the padded image
        a = x_ref[0, off:off + m, :]            # (OH*Wp, Cin) bf16
        acc = acc + jnp.dot(a, w_ref[t], preferred_element_type=jnp.float32)
        t += 1
    r = acc + b_ref[...]
    if relu:
        r = jnp.maximum(r, 0.0)
    r = r.astype(o_ref.dtype)
    # Junk columns (the 2 right-edge pad columns per row) are dropped row by row.
    for row in range(OH):
        o_ref[0, row] = r[row * Wp:row * Wp + OW, :]


def conv2d_taps(x, cp):
    """Stride-1, kh=kw=3, pad=1 conv.  x: (B, H, W, Cin) -> (B, H, W, Cout) bf16."""
    B, H, W, Cin = x.shape
    kh, kw, pad = cp['kh'], cp['kw'], cp['pad']
    OH, OW = H, W
    Wp = W + 2 * pad
    Hp = H + 2 * pad + 1                         # +1 zero row so the last tap never overruns
    Cout = cp['N']

    xb = x.astype(jnp.bfloat16)
    xp = jnp.pad(xb, ((0, 0), (pad, pad + 1), (pad, pad), (0, 0)))
    xf = xp.reshape(B, Hp * Wp, Cin)             # free reshape (adjacent dims)

    taps = [(di, dj) for di in range(kh) for dj in range(kw)]

    return pl.pallas_call(
        partial(_tap_conv_kernel, OH=OH, OW=OW, Wp=Wp, taps=taps, relu=cp['relu']),
        out_shape=jax.ShapeDtypeStruct((B, OH, OW, Cout), jnp.bfloat16),
        grid_spec=pltpu.PrefetchScalarGridSpec(
            num_scalar_prefetch=0, grid=(B,),
            in_specs=[pl.BlockSpec((1, Hp * Wp, Cin), lambda b: (b, 0, 0)),
                      pl.BlockSpec((kh * kw, Cin, Cout), lambda b: (0, 0, 0)),
                      pl.BlockSpec((1, Cout), lambda b: (0, 0))],
            out_specs=pl.BlockSpec((1, OH, OW, Cout), lambda b: (b, 0, 0, 0))),
        compiler_params=pltpu.CompilerParams(
            dimension_semantics=("parallel",), vmem_limit_bytes=VMEM_LIMIT),
    )(xf, cp['w'], cp['b'])


def conv2d(x, cp, residual=None):
    if cp['mode'] == 'taps':
        assert residual is None
        return conv2d_taps(x, cp)
    return conv2d_nhwc(x, cp, residual=residual)


# ---------------------------------------------------------------------------
# MaxPool (lane-dense Pallas VPU kernel, bf16)
# ---------------------------------------------------------------------------

_NEG = -3.0e38   # finite "-inf" pad value, representable in bf16


def _pool_max_kernel(x_ref, o_ref, *, kk, relu):
    m = x_ref[0]
    for t in range(1, kk):
        m = jnp.maximum(m, x_ref[t])
    if relu:
        m = jnp.maximum(m, 0.0)
    o_ref[...] = m


def pallas_maxpool2d_nhwc(x, k, stride, padding=0, relu=False):
    B, H, W, C = x.shape
    dt = x.dtype
    if padding:
        x = jnp.pad(x, ((0, 0), (padding, padding), (padding, padding), (0, 0)),
                    constant_values=_NEG)
    Hp, Wp = H + 2 * padding, W + 2 * padding
    OH = (Hp - k) // stride + 1
    OW = (Wp - k) // stride + 1
    wins = [x[:, i:i + stride * (OH - 1) + 1:stride,
              j:j + stride * (OW - 1) + 1:stride, :]
            for i in range(k) for j in range(k)]
    kk = k * k
    stk = jnp.stack(wins, axis=0).reshape(kk, -1)        # lane-dense flatten

    T = B * OH * OW * C
    LANES = 1024
    R = -(-T // LANES)
    rb = min(64, _round_up(R, 8))
    Rp = _round_up(R, rb)
    stk = jnp.pad(stk, ((0, 0), (0, Rp * LANES - T)), constant_values=_NEG)
    stk = stk.reshape(kk, Rp, LANES)

    out = pl.pallas_call(
        partial(_pool_max_kernel, kk=kk, relu=relu),
        out_shape=jax.ShapeDtypeStruct((Rp, LANES), dt),
        grid=(Rp // rb,),
        in_specs=[pl.BlockSpec((kk, rb, LANES), lambda i: (0, i, 0))],
        out_specs=pl.BlockSpec((rb, LANES), lambda i: (i, 0)),
        compiler_params=pltpu.CompilerParams(
            dimension_semantics=("parallel",), vmem_limit_bytes=VMEM_LIMIT),
    )(stk)
    return out.reshape(-1)[:T].reshape(B, OH, OW, C)


# ---------------------------------------------------------------------------
# Fused head: global-avg-pool -> resnet.fc (+ model ReLU) -> Dropout(eval) -> fc
# ---------------------------------------------------------------------------

def _head_kernel(x_ref, w1_ref, b1_ref, w2_ref, b2_ref, o_ref, *, hw):
    x = x_ref[...].astype(jnp.float32)                    # (B, HW, 2048)
    pooled = jnp.sum(x, axis=1) * (1.0 / hw)              # AdaptiveAvgPool2d(1)
    h = jnp.dot(pooled.astype(jnp.bfloat16), w1_ref[...],
                preferred_element_type=jnp.float32) + b1_ref[...]
    h = jnp.maximum(h, 0.0)                                # model's ReLU after resnet
    # TODO(synk): Dropout uses eval-mode (identity) semantics.
    o = jnp.dot(h.astype(jnp.bfloat16), w2_ref[...],
                preferred_element_type=jnp.float32) + b2_ref[...]
    o_ref[...] = o


def pallas_head(x, hp):
    """x: (B, H, W, 2048) bf16 -> (B, output_size) f32, all in one kernel."""
    B, H, W, C = x.shape
    xr = x.reshape(B, H * W, C)
    N1 = hp['w1'].shape[1]
    N2 = hp['w2'].shape[1]
    return pl.pallas_call(
        partial(_head_kernel, hw=H * W),
        out_shape=jax.ShapeDtypeStruct((B, N2), jnp.float32),
        grid_spec=pltpu.PrefetchScalarGridSpec(
            num_scalar_prefetch=0, grid=(1,),
            in_specs=[pl.BlockSpec((B, H * W, C), lambda i: (0, 0, 0)),
                      pl.BlockSpec((C, N1), lambda i: (0, 0)),
                      pl.BlockSpec((1, N1), lambda i: (0, 0)),
                      pl.BlockSpec((N1, N2), lambda i: (0, 0)),
                      pl.BlockSpec((1, N2), lambda i: (0, 0))],
            out_specs=pl.BlockSpec((B, N2), lambda i: (0, 0))),
        compiler_params=pltpu.CompilerParams(vmem_limit_bytes=VMEM_LIMIT),
    )(xr, hp['w1'], hp['b1'], hp['w2'], hp['b2'])


# ---------------------------------------------------------------------------
# affine_grid / grid_sample (align_corners=False, bilinear, zero padding)
# TODO(synk): grid_sample's irregular 2-D gather has no clean Pallas TPU mapping;
#             it is computed in plain JAX (XLA gather).
# ---------------------------------------------------------------------------

def affine_grid(theta, H, W):
    xs = (jnp.arange(W, dtype=jnp.float32) * 2 + 1) / W - 1
    ys = (jnp.arange(H, dtype=jnp.float32) * 2 + 1) / H - 1
    gx, gy = jnp.meshgrid(xs, ys)
    base = jnp.stack([gx, gy, jnp.ones_like(gx)], axis=-1)   # (H, W, 3)
    return jnp.einsum('hwk,bjk->bhwj', base, theta)          # (B, H, W, 2)


def grid_sample_bilinear_nhwc(x, grid):
    B, H, W, C = x.shape
    gx, gy = grid[..., 0], grid[..., 1]
    ix = ((gx + 1) * W - 1) / 2
    iy = ((gy + 1) * H - 1) / 2
    x0 = jnp.floor(ix)
    y0 = jnp.floor(iy)
    x1, y1 = x0 + 1, y0 + 1
    wx1, wy1 = ix - x0, iy - y0
    wx0, wy0 = 1 - wx1, 1 - wy1
    flat = x.reshape(B, H * W, C)

    def gather(yy, xx):
        valid = ((xx >= 0) & (xx <= W - 1) & (yy >= 0) & (yy <= H - 1)).astype(x.dtype)
        xxc = jnp.clip(xx, 0, W - 1).astype(jnp.int32)
        yyc = jnp.clip(yy, 0, H - 1).astype(jnp.int32)
        idx = (yyc * W + xxc).reshape(B, H * W)
        g = jax.vmap(lambda img, idf: img[idf, :])(flat, idx)
        return g.reshape(B, H, W, C) * valid[..., None]

    return (gather(y0, x0) * (wy0 * wx0)[..., None]
            + gather(y0, x1) * (wy0 * wx1)[..., None]
            + gather(y1, x0) * (wy1 * wx0)[..., None]
            + gather(y1, x1) * (wy1 * wx1)[..., None])


# ---------------------------------------------------------------------------
# Deterministic parameter construction + one-time weight preprocessing
# ---------------------------------------------------------------------------

class ParamGen:
    def __init__(self, seed):
        self.key = jax.random.PRNGKey(seed)

    def take(self):
        self.key, k = jax.random.split(self.key)
        return k

    def conv(self, cout, cin, kh, kw):
        fan_in = cin * kh * kw
        return jax.random.normal(self.take(), (cout, cin, kh, kw),
                                 jnp.float32) * math.sqrt(2.0 / fan_in)

    def conv_bias(self, cout, fan_in):
        b = 1.0 / math.sqrt(fan_in)
        return jax.random.uniform(self.take(), (cout,), jnp.float32, -b, b)

    def linear(self, out_f, in_f):
        b = 1.0 / math.sqrt(in_f)
        w = jax.random.uniform(self.take(), (out_f, in_f), jnp.float32, -b, b)
        bias = jax.random.uniform(self.take(), (out_f,), jnp.float32, -b, b)
        return w, bias


def bn_fold(w, eps=1e-5):
    """Fold a fresh inference-mode BatchNorm (gamma=1, beta=0, mean=0, var=1)."""
    cout = w.shape[0]
    gamma = jnp.ones((cout,), jnp.float32)
    beta = jnp.zeros((cout,), jnp.float32)
    mean = jnp.zeros((cout,), jnp.float32)
    var = jnp.ones((cout,), jnp.float32)
    scale = gamma / jnp.sqrt(var + eps)
    return w * scale[:, None, None, None], beta - mean * scale


def _prep_matmul(wmat, bias, relu):
    """wmat: (K, N) f32 -> bf16 weight padded to (Kp, Np), f32 bias (1, Np)."""
    K, N = wmat.shape
    tn, Np = _pick_tn(N)
    tk, Kp = _pick_tk(K, tn)
    w_p = jnp.pad(wmat.astype(jnp.bfloat16), ((0, Kp - K), (0, Np - N)))
    if bias is None:
        bias = jnp.zeros((N,), jnp.float32)
    b_p = jnp.pad(bias.astype(jnp.float32), (0, Np - N)).reshape(1, Np)
    return dict(mode='mm', w=w_p, b=b_p, K=K, N=N, Kp=Kp, Np=Np, tk=tk, tn=tn, relu=relu)


def _prep_conv(w, b, stride, padding, relu):
    """PyTorch (Cout, Cin, kh, kw) -> (kh*kw*Cin, Cout) matrix matching NHWC patches."""
    Cout, Cin, kh, kw = w.shape
    wmat = jnp.transpose(w, (2, 3, 1, 0)).reshape(kh * kw * Cin, Cout)
    cp = _prep_matmul(wmat, b, relu)
    cp.update(kh=kh, kw=kw, stride=stride, pad=padding)
    return cp


def _prep_conv_taps(w, b, relu=True):
    """PyTorch (Cout, Cin, 3, 3) -> (9, Cin, Cout) per-tap matrices for the tap kernel."""
    Cout, Cin, kh, kw = w.shape
    wt = jnp.transpose(w, (2, 3, 1, 0)).reshape(kh * kw, Cin, Cout).astype(jnp.bfloat16)
    if b is None:
        b = jnp.zeros((Cout,), jnp.float32)
    bias = b.astype(jnp.float32).reshape(1, Cout)
    return dict(mode='taps', w=wt, b=bias, N=Cout, kh=kh, kw=kw,
                pad=(kh - 1) // 2, stride=1, relu=relu)


def build_params(seed=42, output_size=228):
    g = ParamGen(seed)
    P = {}

    # STN localization (ReLU is applied after the pools in the model -> fused there)
    P['loc_conv1'] = _prep_conv(g.conv(8, 3, 7, 7), g.conv_bias(8, 3 * 49), 1, 0, relu=False)
    P['loc_conv2'] = _prep_conv(g.conv(10, 8, 5, 5), g.conv_bias(10, 8 * 25), 1, 0, relu=False)

    # fc_loc[0]: permute input features from NCHW-flatten (c,h,w) to NHWC-flatten (h,w,c)
    w1, b1 = g.linear(32, 10 * 52 * 52)
    w1 = w1.reshape(32, 10, 52, 52).transpose(0, 2, 3, 1).reshape(32, 10 * 52 * 52)
    P['fc_loc1'] = _prep_matmul(w1.T, b1, relu=True)
    # fc_loc[2]: zero weight, identity-theta bias (as in the PyTorch __init__)
    P['fc_loc2'] = _prep_matmul(jnp.zeros((32, 6), jnp.float32),
                                jnp.array([1, 0, 0, 0, 1, 0], jnp.float32), relu=False)

    # ResNet-50 (BN folded)
    w, b = bn_fold(g.conv(64, 3, 7, 7))
    P['rn_conv1'] = _prep_conv(w, b, 2, 3, relu=True)
    layers_cfg = [(64, 3, 1), (128, 4, 2), (256, 6, 2), (512, 3, 2)]
    inpl = 64
    layers = []
    for planes, blocks, stride in layers_cfg:
        blks = []
        for bi in range(blocks):
            s = stride if bi == 0 else 1
            c1 = _prep_conv(*bn_fold(g.conv(planes, inpl, 1, 1)), 1, 0, relu=True)
            w2, b2 = bn_fold(g.conv(planes, planes, 3, 3))
            # stride-1 3x3 convs use the no-im2col tap kernel; stride-2 use the matmul path
            c2 = _prep_conv_taps(w2, b2) if s == 1 else _prep_conv(w2, b2, s, 1, relu=True)
            c3 = _prep_conv(*bn_fold(g.conv(planes * 4, planes, 1, 1)), 1, 0, relu=False)
            blk = {'conv1': c1, 'conv2': c2, 'conv3': c3}
            if bi == 0:
                blk['down'] = _prep_conv(*bn_fold(g.conv(planes * 4, inpl, 1, 1)), s, 0, relu=False)
            blks.append(blk)
            inpl = planes * 4
        layers.append(blks)
    P['rn_layers'] = layers

    # Fused head: resnet.fc (2048->1000) + ReLU + final fc (1000->output_size)
    wfc, bfc = g.linear(1000, 2048)
    wf, bf = g.linear(output_size, 1000)
    P['head'] = dict(w1=wfc.T.astype(jnp.bfloat16), b1=bfc.reshape(1, -1).astype(jnp.float32),
                     w2=wf.T.astype(jnp.bfloat16), b2=bf.reshape(1, -1).astype(jnp.float32))
    return P


# ---------------------------------------------------------------------------
# Forward pass (NHWC, bf16 activations internally)
# ---------------------------------------------------------------------------

def bottleneck_forward(x, blk):
    out = conv2d(x, blk['conv1'])                         # 1x1 + ReLU
    out = conv2d(out, blk['conv2'])                       # 3x3 (+ ReLU); tap kernel when s=1
    identity = conv2d(x, blk['down']) if 'down' in blk else x
    B, OH, OW, Cid = identity.shape
    res = identity.reshape(B * OH * OW, Cid)              # bf16 residual, fused into conv3
    return conv2d(out, blk['conv3'], residual=res)


def stn(x, P):
    """x: NHWC (B, 224, 224, 3) f32."""
    B, H, W, _ = x.shape
    xs = conv2d_nhwc(x, P['loc_conv1'])                   # (B, 218, 218, 8)
    xs = pallas_maxpool2d_nhwc(xs, 2, 2, relu=True)       # (B, 109, 109, 8)
    xs = conv2d_nhwc(xs, P['loc_conv2'])                  # (B, 105, 105, 10)
    xs = pallas_maxpool2d_nhwc(xs, 2, 2, relu=True)       # (B, 52, 52, 10)
    xs = xs.reshape(B, -1)                                # NHWC flatten (weight pre-permuted)
    h = pallas_matmul_prepped(xs, P['fc_loc1'])           # (B, 32) + ReLU
    theta = pallas_matmul_prepped(h, P['fc_loc2'])        # (B, 6)
    theta = theta.astype(jnp.float32).reshape(B, 2, 3)
    grid = affine_grid(theta, H, W)
    return grid_sample_bilinear_nhwc(x, grid)


def fashion_forward(x_nchw, P):
    x = jnp.transpose(x_nchw, (0, 2, 3, 1)).astype(jnp.float32)   # NCHW -> NHWC once
    x = stn(x, P)
    # ResNet-50 backbone
    x = conv2d_nhwc(x, P['rn_conv1'])                     # (B, 112, 112, 64), ReLU fused
    x = pallas_maxpool2d_nhwc(x, 3, 2, padding=1)         # (B, 56, 56, 64)
    for layer in P['rn_layers']:
        for blk in layer:
            x = bottleneck_forward(x, blk)
    # avgpool + resnet.fc + ReLU + Dropout(eval) + fc, fused in one kernel
    return pallas_head(x, P['head'])                      # (B, 228) f32


if __name__ == "__main__":
    params = build_params(seed=42, output_size=228)
    # Input size 224x224 is forced by the module (10*52*52 flatten in fc_loc).
    x = jax.random.normal(jax.random.PRNGKey(0), (2, 3, 224, 224), jnp.float32)
    y = fashion_forward(x, params)
    y = jax.block_until_ready(y)
    assert y.shape == (2, 228), y.shape
    assert bool(jnp.all(jnp.isfinite(y)))
    print("KERNEL_OK")
</pallas_src>

<mosaic_0001>
module attributes {stable_mosaic.version = 11 : i64} {
  func.func @_mm_kernel(%arg0: i32, %arg1: i32, %arg2: i32, %arg3: memref<872x147xbf16, #tpu.memory_space<vmem>>, %arg4: memref<147x8xbf16, #tpu.memory_space<vmem>>, %arg5: memref<1x8xf32, #tpu.memory_space<vmem>>, %arg6: memref<872x8xbf16, #tpu.memory_space<vmem>>, %arg7: memref<872x8xf32, #tpu.memory_space<vmem>>) attributes {dimension_semantics = [#tpu.dimension_semantics<parallel>, #tpu.dimension_semantics<parallel>, #tpu.dimension_semantics<arbitrary>], iteration_bounds = array<i64: 109, 1, 1>, scalar_prefetch = 0 : i64, scratch_operands = 1 : i64, tpu.core_type = #tpu.core_type<tc>, window_params = [{transform_indices = @transform_0, window_bounds = array<i64: 872, 147>}, {transform_indices = @transform_1, window_bounds = array<i64: 147, 8>}, {transform_indices = @transform_2, window_bounds = array<i64: 1, 8>}, {transform_indices = @transform_3, window_bounds = array<i64: 872, 8>}]} {
    %c0_i32 = arith.constant 0 : i32
    %0 = arith.cmpi eq, %arg2, %c0_i32 : i32
    %1 = arith.extui %0 : i1 to i32
    %c0_i32_0 = arith.constant 0 : i32
    %2 = arith.cmpi ne, %1, %c0_i32_0 : i32
    scf.if %2 {
      %cst_10 = arith.constant 0.000000e+00 : f32
      %12 = vector.broadcast %cst_10 : f32 to vector<872x8xf32>
      %c0_11 = arith.constant 0 : index
      %c0_12 = arith.constant 0 : index
      %13 = vector.load %arg7[%c0_11, %c0_12] : memref<872x8xf32, #tpu.memory_space<vmem>>, vector<872x8xf32>
      tpu.vector_store %arg7[%c0_11, %c0_12], %12 {strides = array<i32>} : memref<872x8xf32, #tpu.memory_space<vmem>>, vector<872x8xf32>,
    } else {
    }
    %c0 = arith.constant 0 : index
    %c0_1 = arith.constant 0 : index
    %3 = vector.load %arg7[%c0, %c0_1] : memref<872x8xf32, #tpu.memory_space<vmem>>, vector<872x8xf32>
    %c0_2 = arith.constant 0 : index
    %c0_3 = arith.constant 0 : index
    %4 = vector.load %arg3[%c0_2, %c0_3] : memref<872x147xbf16, #tpu.memory_space<vmem>>, vector<872x147xbf16>
    %c0_4 = arith.constant 0 : index
    %c0_5 = arith.constant 0 : index
    %5 = vector.load %arg4[%c0_4, %c0_5] : memref<147x8xbf16, #tpu.memory_space<vmem>>, vector<147x8xbf16>
    %cst = arith.constant dense<0.000000e+00> : vector<872x8xf32>
    %6 = tpu.matmul %4, %5, %cst {dimension_numbers = #tpu.dot_dimension_numbers<[1], [0], [0], [1], [0, 0, 1, 1], [], []>} : vector<872x147xbf16>, vector<147x8xbf16>, vector<872x8xf32> -> vector<872x8xf32>
    %7 = arith.addf %3, %6 : vector<872x8xf32>
    %c0_6 = arith.constant 0 : index
    %c0_7 = arith.constant 0 : index
    %8 = vector.load %arg7[%c0_6, %c0_7] : memref<872x8xf32, #tpu.memory_space<vmem>>, vector<872x8xf32>
    tpu.vector_store %arg7[%c0_6, %c0_7], %7 {strides = array<i32>} : memref<872x8xf32, #tpu.memory_space<vmem>>, vector<872x8xf32>,
    %c0_i32_8 = arith.constant 0 : i32
    %9 = arith.cmpi eq, %arg2, %c0_i32_8 : i32
    %10 = arith.extui %9 : i1 to i32
    %c0_i32_9 = arith.constant 0 : i32
    %11 = arith.cmpi ne, %10, %c0_i32_9 : i32
    scf.if %11 {
      %c0_10 = arith.constant 0 : index
      %c0_11 = arith.constant 0 : index
      %12 = vector.load %arg7[%c0_10, %c0_11] : memref<872x8xf32, #tpu.memory_space<vmem>>, vector<872x8xf32>
      %c0_12 = arith.constant 0 : index
      %c0_13 = arith.constant 0 : index
      %13 = vector.load %arg5[%c0_12, %c0_13] : memref<1x8xf32, #tpu.memory_space<vmem>>, vector<1x8xf32>
      %14 = vector.broadcast %13 : vector<1x8xf32> to vector<872x8xf32>
      %15 = arith.addf %12, %14 : vector<872x8xf32>
      %16 = arith.truncf %15 : vector<872x8xf32> to vector<872x8xbf16>
      %c0_14 = arith.constant 0 : index
      %c0_15 = arith.constant 0 : index
      %17 = vector.load %arg6[%c0_14, %c0_15] : memref<872x8xbf16, #tpu.memory_space<vmem>>, vector<872x8xbf16>
      tpu.vector_store %arg6[%c0_14, %c0_15], %16 {strides = array<i32>} : memref<872x8xbf16, #tpu.memory_space<vmem>>, vector<872x8xbf16>,
    } else {
    }
    return
  }
  func.func @transform_0(%arg0: i32, %arg1: i32, %arg2: i32) -> (i32, i32) {
    %c0_i32 = arith.constant 0 : i32
    return %arg0, %arg2 : i32, i32
  }
  func.func @transform_1(%arg0: i32, %arg1: i32, %arg2: i32) -> (i32, i32) {
    %c0_i32 = arith.constant 0 : i32
    return %arg2, %arg1 : i32, i32
  }
  func.func @transform_2(%arg0: i32, %arg1: i32, %arg2: i32) -> (i32, i32) {
    %c0_i32 = arith.constant 0 : i32
    %c0_i32_0 = arith.constant 0 : i32
    return %c0_i32, %arg1 : i32, i32
  }
  func.func @transform_3(%arg0: i32, %arg1: i32, %arg2: i32) -> (i32, i32) {
    %c0_i32 = arith.constant 0 : i32
    return %arg0, %arg1 : i32, i32
  }
}

</mosaic_0001>

<bundles_post_ra>
// kernel: tpu_custom_call.1
= control target key start
LH: loop header
LB: loop body
LE: loop exit
PB: predicated region body
PF: predicated region fallthrough
CT: control target
= control target key end

     0   :  { %8 = vsyncpa [#allocation4], 0  ;;  %s4703_s0 = inlined_call_operand.hbm [shape: bf16[95048,147], index: 0, kind: input, shape index: {}]   ;;  %s4704_s1 = inlined_call_operand.vmem [shape: bf16[147,8], index: 1, kind: input, shape index: {}]   ;;  %s4705_s2 = inlined_call_operand.vmem [shape: f32[1,8], index: 2, kind: input, shape index: {}]   ;;  %s4706_s3 = inlined_call_operand.vmem [shape: bf16[95048,8], index: 3, kind: output, shape index: {}]  }
   0x1   :  { %10 = vsyncpa [#allocation4 + $0x1], 0  ;;  %s3709_s12 = smov 0   ;;  %s3711_s13 = smov 0  }
   0x2   :  { %s3713_s14 = smov 0   ;;  %s3715_s15 = smov 0  }
   0x3   :  { %s3717_s16 = smov 0   ;;  %s3719_s17 = smov 0  }
   0x4 LB: > { %s2935_s18 = sadd.s32 4294967295, %s3681_s17   ;;  %s35_s19 = sadd.s32 1, %s3677_s16  ;;  %s3681_s17 = sphi %s3719_s17, %s16_s17   ;;  %s3677_s16 = sphi %s3717_s16, %s4714_s16   ;;  %s3673_s15 = sphi %s3715_s15, %s4713_s15   ;;  %s3669_s14 = sphi %s3713_s14, %s4712_s14   ;;  %s3665_s13 = sphi %s3711_s13, %s4711_s13   ;;  %s3661_s12 = sphi %s3709_s12, %s4710_s12  }
   0x5   : > { %p37_p0 = scmp.ge.s32.totalorder %s35_s19, 109  ;;  %s44_s20 = sadd.s32 1, %s3669_s14 }
   0x6   : > { %p51_p1 = scmp.ne.s32.totalorder %s3669_s14, %s3665_s13  ;;  %p52_p2 = scmp.eq.s32.totalorder %s3681_s17, 0 }
   0x7   : > { %s4716_s19 = smov (%p37_p0, %s35_s19), 0  ;;  %p57_p4 = scmp.ne.s32.totalorder %s3665_s13, %s3661_s12 }
   0x8   : > { %p53_p3 = por %p52_p2, %p51_p1  ;;  %s39_s21 = ssub.s32 %s3677_s16, %s4716_s19 }
   0x9   : > { %p58_p5 = scmp.eq.s32.totalorder %s2935_s18, 0  ;;  %p42_p6 = scmp.eq.s32.totalorder %s39_s21, 0 }
   0xa   : > { %p3372_p8 = scmp.lt.s32.totalorder %s3681_s17, 109  ;;  %s181_s24 = sand.u32 1, %s3669_s14  }
   0xb   : > { %p3748_p7 = por %p58_p5, %p57_p4  ;;  %s3343_s25 = smul.u32 13952, %s3677_s16 }
   0xc   : > { %s3754_s23 = scalar_select %p42_p6, %s3669_s14, %s44_s20  }
   0xd   : > { %s3364_s26 = smul.u32 872, %s181_s24  ;;  %s3761_s29 = scalar_lea.hbm %s4703_s0, %s3343_s25 }
   0xe   : > { %p3763_p9 = pnand %p3372_p8, %p53_p3  ;;  %s3769_s6 = scalar_lea.sflag [#allocation4], %s181_s24 }
   0xf   : > { %s185_s4 = scalar_lea.vmem [#allocation3], %s3364_s26  ;;  %s3601_s7 = scalar_lea.hbm %s3761_s29, 13952 }
  0x10   : > { %s195_s5 = sshll.u32 %s185_s4, 4  ;;  %p3602_p10 = scmp.ne.s32.totalorder %s3761_s29, %s3601_s7  ;;  %s3767_s5 = int_to_ptr.vmem [resolvable:$true] %s195_s5 }
  0x11   : > { %p3603_p11 = pneg %p3763_p9  ;;  %s3606_s10 = scalar_lea.hbm %s4703_s0, 1520768 }
  0x12   : > { %p3607_p0 = scmp.lt.u32.totalorder %s3761_s29, %s4703_s0  ;;  %p3608_p1 = scmp.lt.u32.totalorder %s3606_s10, %s3601_s7 }
  0x13   : > { %p3604_p12 = pnand %p3603_p11, %p3602_p10  ;;  %p3610_p3 = scmp.lt.u32.totalorder %s3601_s7, %s3761_s29 }
  0x14   : > { %p3609_p2 = por %p3608_p1, %p3607_p0 }
  0x15   : > { %p3605_p13 = pneg %p3604_p12 }
  0x16   : > { %p3611_p4 = por %p3610_p3, %p3609_p2 }
  0x18   : > { %p3612_p5 = pnand %p3611_p4, %p3605_p13 }
  0x1a   : > { %3615 = shalt.err (!%p3612_p5)
}
  0x1b   : > { %s3616_s18 = scalar_lea.vmem %s3767_s5, 13952  ;;  %s3683_s20 = smov [#allocation3]  }
  0x1c   : > { %p3617_p6 = scmp.ne.s32.totalorder %s3767_s5, %s3616_s18  ;;  %s3621_s21 = sshll.u32 %s3683_s20, 4  ;;  %s3622_s21 = int_to_ptr.vmem [resolvable:$false] %s3621_s21 }
  0x1d   : > { %s3623_s24 = scalar_lea.vmem %s3622_s21, 27904  ;;  %p3624_p12 = scmp.lt.s32.totalorder %s3767_s5, %s3622_s21 }
  0x1e   : > { %p3619_p8 = pnand %p3617_p6, %p3603_p11  ;;  %p3625_p0 = scmp.lt.s32.totalorder %s3623_s24, %s3616_s18 }
  0x20   : > { %p3620_p10 = pneg %p3619_p8  ;;  %p3626_p1 = por %p3625_p0, %p3624_p12 }
  0x22   : > { %p3627_p2 = pnand %p3626_p1, %p3620_p10 }
  0x24   : > { %3630 = shalt.err (!%p3627_p2)
}
  0x25   : > { %s3684_s25 = smov 128   ;;  %s3685_s26 = smov 8  }
  0x26   : > { %3371 = dma.hbm_to_vmem [thread:$0]  (!%p3763_p9), %s3761_s29, 13952, %s3767_s5, %s3769_s6, %s3684_s25, %s3684_s25, %s3685_s26  }
  0x27   : > { %p2943_p11 = scmp.ge.s32.totalorder %s3681_s17, 1  ;;  %p203_p13 = scmp.lt.s32.totalorder %s3681_s17, 110 }
  0x29   : > { %p204_p3 = pnand %p2943_p11, %p203_p13 }
  0x2a   : > { %s209_s27 = sand.u32 (!%p204_p3), 1, %s3665_s13  }
  0x2b   : > { %207 = sbr.rel (%p204_p3) target bundleno = 537 (0x219), region = 32  ;;  %s210_s4 = scalar_lea.sflag (!%p204_p3), [#allocation4], %s209_s27 }
  0x2c   : > { %s3365_s28 = smul.u32 (!%p204_p3), 872, %s209_s27 }
  0x2e   : > { %s3800_s7 = scalar_lea.vmem (!%p204_p3), [#allocation3], %s3365_s28 }
  0x32   : > { %3656 = dma.done.wait (%p3748_p7), %s210_s4, 13952  }
  0x33   : > { %3658 = vsyncadd (%p3748_p7), %s210_s4, 4294953344  ;;  %v3686_v0 = vmov 0   ;;  %v3426_v1 = vld [vmem:[%s4704_s1] sm:$0xff]   ;;  %v3427_v2 = vld [vmem:[%s4704_s1 + $0x8] sm:$0xff]   ;;  %vm1174_vm0 = vcmask 154624   ;;  %vm1340_vm1 = vcmask 1040384  }
  0x34   : > { %1347 = vmatprep.subr.bf16.mxu0 %v3686_v0  ;;  %3344 = vmatprep.subr.bf16.mxu1 %v3686_v0  ;;  %v3428_v3 = vld [vmem:[%s4704_s1 + $0x10] sm:$0xff]   ;;  %v3429_v4 = vld [vmem:[%s4704_s1 + $0x18] sm:$0xff]   ;;  %v3430_v7 = vld [vmem:[%s4704_s1 + $0x20] sm:$0xff]   ;;  %vm1341_vm2 = vcmask 1041408   ;;  %v3687_v11 = vmov 65535   ;;  %vm278_vm3 = vcmask 64512  }
  0x35   : > { %1348 = vmatpush1.bf16.msra.mxu0 %v3426_v1  ;;  %3354 = vmatpush1.bf16.msra.mxu1 %v3426_v1  ;;  %v3438_v5 = vld [vmem:[%s3800_s7 + $0x4] ss:$8 sps:$4 sm:$0xff]   ;;  %v1342_v12 = vsel %vm1340_vm1, 4294967295, %v3687_v11  ;;  %v3434_v13 = vld [vmem:[%s4704_s1 + $0x40] sm:$0xff]   ;;  %v3436_v17 = vld [vmem:[%s3800_s7] ss:$8 sps:$4 sm:$0xff]  }
  0x36   : > { %1349 = vmatprep.subr.bf16.mxu0 %v3686_v0  ;;  %3345 = vmatprep.subr.bf16.mxu1 %v3686_v0  ;;  %v3441_v6 = vld [vmem:[%s3800_s7 + $0x1c4] ss:$8 sps:$4 sm:$0xff]   ;;  %v3435_v14 = vld [vmem:[%s4704_s1 + $0x48] ss:$0 sps:$4 sm:$0x33]   ;;  %v1343_v15 = vsel %vm1341_vm2, %v1342_v12, 0 }
  0x37   : > { %3065 = vmatprep.mubr.msk.bf16.mxu0 %vm1174_vm0, %v3438_v5  ;;  %3093 = vmatprep.mubr.msk.bf16.mxu1 %vm1174_vm0, %v3441_v6  ;;  %v3431_v8 = vld [vmem:[%s4704_s1 + $0x28] sm:$0xff]   ;;  %v3432_v9 = vld [vmem:[%s4704_s1 + $0x30] sm:$0xff]   ;;  %v3433_v10 = vld [vmem:[%s4704_s1 + $0x38] sm:$0xff]   ;;  %v1345_v16 = vand.u32 %v3435_v14, %v1343_v15  ;;  %v3688_v59 = vmov 0.0   ;;  %s264_s30 = smul.u32 109, %s3673_s15  ;;  %vm2703_vm4 = vcmask 60416  }
  0x38   : > { %v3439_v18 = vld [vmem:[%s3800_s7 + $0x1c0] ss:$8 sps:$4 sm:$0xff]   ;;  %v3442_v19 = vld [vmem:[%s3800_s7 + $0x14] ss:$8 sps:$4 sm:$0xff]   ;;  %v3444_v21 = vld [vmem:[%s3800_s7 + $0x10] ss:$8 sps:$4 sm:$0xff]  }
  0x39   : > { %1350 = vmatpush1.bf16.msra.mxu0 %v3427_v2  ;;  %3355 = vmatpush1.bf16.msra.mxu1 %v3427_v2  ;;  %v3445_v20 = vld [vmem:[%s3800_s7 + $0x1d4] ss:$8 sps:$4 sm:$0xff]   ;;  %v3447_v22 = vld [vmem:[%s3800_s7 + $0x24] ss:$8 sps:$4 sm:$0xff]   ;;  %v3449_v23 = vld [vmem:[%s3800_s7 + $0x1d0] ss:$8 sps:$4 sm:$0xff]  }
  0x3a   : > { %1351 = vmatprep.subr.bf16.mxu0 %v3686_v0  ;;  %3346 = vmatprep.subr.bf16.mxu1 %v3686_v0  ;;  %v3451_v24 = vld [vmem:[%s3800_s7 + $0x1e4] ss:$8 sps:$4 sm:$0xff]   ;;  %v3450_v25 = vld [vmem:[%s3800_s7 + $0x20] ss:$8 sps:$4 sm:$0xff]   ;;  %v3453_v26 = vld [vmem:[%s3800_s7 + $0x34] ss:$8 sps:$4 sm:$0xff]  }
  0x3b   : > { %v3455_v27 = vld [vmem:[%s3800_s7 + $0x1e0] ss:$8 sps:$4 sm:$0xff]   ;;  %v3457_v28 = vld [vmem:[%s3800_s7 + $0x1f4] ss:$8 sps:$4 sm:$0xff]   ;;  %v3456_v29 = vld [vmem:[%s3800_s7 + $0x30] ss:$8 sps:$4 sm:$0xff]  }
  0x3c   : > { %v3459_v30 = vld [vmem:[%s3800_s7 + $0x44] ss:$8 sps:$4 sm:$0xff]   ;;  %v3461_v31 = vld [vmem:[%s3800_s7 + $0x1f0] ss:$8 sps:$4 sm:$0xff]   ;;  %v3462_v33 = vld [vmem:[%s3800_s7 + $0x40] ss:$8 sps:$4 sm:$0xff]  }
  0x3d   : > { %1352 = vmatpush1.bf16.msra.mxu0 %v3428_v3  ;;  %3356 = vmatpush1.bf16.msra.mxu1 %v3428_v3  ;;  %v3463_v32 = vld [vmem:[%s3800_s7 + $0x204] ss:$8 sps:$4 sm:$0xff]   ;;  %v3467_v34 = vld [vmem:[%s3800_s7 + $0x200] ss:$8 sps:$4 sm:$0xff]   ;;  %v3465_v35 = vld [vmem:[%s3800_s7 + $0x54] ss:$8 sps:$4 sm:$0xff]  }
  0x3e   : > { %1353 = vmatprep.subr.bf16.mxu0 %v3686_v0  ;;  %3347 = vmatprep.subr.bf16.mxu1 %v3686_v0  ;;  %v3469_v36 = vld [vmem:[%s3800_s7 + $0x214] ss:$8 sps:$4 sm:$0xff]   ;;  %v3468_v37 = vld [vmem:[%s3800_s7 + $0x50] ss:$8 sps:$4 sm:$0xff]   ;;  %v3471_v39 = vld [vmem:[%s3800_s7 + $0x64] ss:$8 sps:$4 sm:$0xff]  }
  0x3f   : > { %v3473_v38 = vld [vmem:[%s3800_s7 + $0x210] ss:$8 sps:$4 sm:$0xff]   ;;  %v3475_v40 = vld [vmem:[%s3800_s7 + $0x224] ss:$8 sps:$4 sm:$0xff]   ;;  %v3474_v41 = vld [vmem:[%s3800_s7 + $0x60] ss:$8 sps:$4 sm:$0xff]  }
  0x40   : > { %v3479_v42 = vld [vmem:[%s3800_s7 + $0x220] ss:$8 sps:$4 sm:$0xff]   ;;  %v3477_v43 = vld [vmem:[%s3800_s7 + $0x74] ss:$8 sps:$4 sm:$0xff]   ;;  %v3480_v45 = vld [vmem:[%s3800_s7 + $0x70] ss:$8 sps:$4 sm:$0xff]  }
  0x41   : > { %1354 = vmatpush1.bf16.msra.mxu0 %v3429_v4  ;;  %3357 = vmatpush1.bf16.msra.mxu1 %v3429_v4  ;;  %v3481_v44 = vld [vmem:[%s3800_s7 + $0x234] ss:$8 sps:$4 sm:$0xff]   ;;  %v3485_v46 = vld [vmem:[%s3800_s7 + $0x230] ss:$8 sps:$4 sm:$0xff]   ;;  %v3483_v47 = vld [vmem:[%s3800_s7 + $0x84] ss:$8 sps:$4 sm:$0xff]  }
  0x42   : > { %1355 = vmatprep.subr.bf16.mxu0 %v3686_v0  ;;  %3348 = vmatprep.subr.bf16.mxu1 %v3686_v0  ;;  %v3487_v48 = vld [vmem:[%s3800_s7 + $0x244] ss:$8 sps:$4 sm:$0xff]   ;;  %v3486_v49 = vld [vmem:[%s3800_s7 + $0x80] ss:$8 sps:$4 sm:$0xff]   ;;  %v3489_v51 = vld [vmem:[%s3800_s7 + $0x94] ss:$8 sps:$4 sm:$0xff]  }
  0x43   : > { %v3491_v50 = vld [vmem:[%s3800_s7 + $0x240] ss:$8 sps:$4 sm:$0xff]   ;;  %v3493_v52 = vld [vmem:[%s3800_s7 + $0x254] ss:$8 sps:$4 sm:$0xff]   ;;  %v3492_v53 = vld [vmem:[%s3800_s7 + $0x90] ss:$8 sps:$4 sm:$0xff]  }
  0x44   : > { %v3497_v54 = vld [vmem:[%s3800_s7 + $0x250] ss:$8 sps:$4 sm:$0xff]   ;;  %v3495_v55 = vld [vmem:[%s3800_s7 + $0xa4] ss:$8 sps:$4 sm:$0xff]   ;;  %v3901_v57 = vld [vmem:[%s3800_s7 + $0xa0] ss:$8 sps:$4 sm:$0xff]  }
  0x45   : > { %1356 = vmatpush1.bf16.msra.mxu0 %v3430_v7  ;;  %3358 = vmatpush1.bf16.msra.mxu1 %v3430_v7  ;;  %v3499_v56 = vld [vmem:[%s3800_s7 + $0x264] ss:$8 sps:$4 sm:$0xff]   ;;  %v3904_v58 = vld [vmem:[%s3800_s7 + $0x260] ss:$8 sps:$4 sm:$0xff]   ;;  %279 = vst.msk [vmem:[#allocation2] sm:$0xff] %vm278_vm3, %v3688_v59  ;;  %280 = vst.msk [vmem:[#allocation2 + $0x8] sm:$0xff] %vm278_vm3, %v3688_v59 }
  0x46   : > { %1357 = vmatprep.subr.bf16.mxu0 %v3686_v0  ;;  %3349 = vmatprep.subr.bf16.mxu1 %v3686_v0  ;;  %281 = vst.msk [vmem:[#allocation2 + $0x10] sm:$0xff] %vm278_vm3, %v3688_v59  ;;  %282 = vst.msk [vmem:[#allocation2 + $0x18] sm:$0xff] %vm278_vm3, %v3688_v59  ;;  %v3501_v60 = vld [vmem:[%s3800_s7 + $0xb4] ss:$8 sps:$4 sm:$0xff]   ;;  %v3504_v62 = vld [vmem:[%s3800_s7 + $0xb0] ss:$8 sps:$4 sm:$0xff]  }
  0x47   : > { %283 = vst.msk [vmem:[#allocation2 + $0x20] sm:$0xff] %vm278_vm3, %v3688_v59  ;;  %284 = vst.msk [vmem:[#allocation2 + $0x28] sm:$0xff] %vm278_vm3, %v3688_v59  ;;  %v3505_v61 = vld [vmem:[%s3800_s7 + $0x274] ss:$8 sps:$4 sm:$0xff]   ;;  %v3509_v63 = vld [vmem:[%s3800_s7 + $0x270] ss:$8 sps:$4 sm:$0xff]  }
  0x48   : > { %285 = vst.msk [vmem:[#allocation2 + $0x30] sm:$0xff] %vm278_vm3, %v3688_v59  ;;  %286 = vst.msk [vmem:[#allocation2 + $0x38] sm:$0xff] %vm278_vm3, %v3688_v59  ;;  %v3511_v1 = vld [vmem:[%s3800_s7 + $0x284] ss:$8 sps:$4 sm:$0xff]   ;;  %v3510_v2 = vld [vmem:[%s3800_s7 + $0xc0] ss:$8 sps:$4 sm:$0xff]  }
  0x49   : > { %1358 = vmatpush1.bf16.msra.mxu0 %v3431_v8  ;;  %3359 = vmatpush1.bf16.msra.mxu1 %v3431_v8  ;;  %287 = vst.msk [vmem:[#allocation2 + $0x40] sm:$0xff] %vm278_vm3, %v3688_v59  ;;  %288 = vst.msk [vmem:[#allocation2 + $0x48] sm:$0xff] %vm278_vm3, %v3688_v59  ;;  %v3515_v3 = vld [vmem:[%s3800_s7 + $0x280] ss:$8 sps:$4 sm:$0xff]   ;;  %v3513_v4 = vld [vmem:[%s3800_s7 + $0xd4] ss:$8 sps:$4 sm:$0xff]  }
  0x4a   : > { %1359 = vmatprep.subr.bf16.mxu0 %v3686_v0  ;;  %3350 = vmatprep.subr.bf16.mxu1 %v3686_v0  ;;  %289 = vst.msk [vmem:[#allocation2 + $0x50] sm:$0xff] %vm278_vm3, %v3688_v59  ;;  %290 = vst.msk [vmem:[#allocation2 + $0x58] sm:$0xff] %vm278_vm3, %v3688_v59  ;;  %v3517_v5 = vld [vmem:[%s3800_s7 + $0x294] ss:$8 sps:$4 sm:$0xff]   ;;  %v3516_v6 = vld [vmem:[%s3800_s7 + $0xd0] ss:$8 sps:$4 sm:$0xff]  }
  0x4b   : > { %291 = vst.msk [vmem:[#allocation2 + $0x60] sm:$0xff] %vm278_vm3, %v3688_v59  ;;  %292 = vst.msk [vmem:[#allocation2 + $0x68] sm:$0xff] %vm278_vm3, %v3688_v59  ;;  %v3521_v7 = vld [vmem:[%s3800_s7 + $0x290] ss:$8 sps:$4 sm:$0xff]   ;;  %v3519_v8 = vld [vmem:[%s3800_s7 + $0xe4] ss:$8 sps:$4 sm:$0xff]  }
  0x4c   : > { %293 = vst.msk [vmem:[#allocation2 + $0x70] sm:$0xff] %vm278_vm3, %v3688_v59  ;;  %294 = vst.msk [vmem:[#allocation2 + $0x78] sm:$0xff] %vm278_vm3, %v3688_v59  ;;  %v3527_v11 = vld [vmem:[%s3800_s7 + $0x2a0] ss:$8 sps:$4 sm:$0xff]   ;;  %v3525_v12 = vld [vmem:[%s3800_s7 + $0xf4] ss:$8 sps:$4 sm:$0xff]  }
  0x4d   : > { %1360 = vmatpush1.bf16.msra.mxu0 %v3432_v9  ;;  %3360 = vmatpush1.bf16.msra.mxu1 %v3432_v9  ;;  %295 = vst.msk [vmem:[#allocation2 + $0x80] sm:$0xff] %vm278_vm3, %v3688_v59  ;;  %296 = vst.msk [vmem:[#allocation2 + $0x88] sm:$0xff] %vm278_vm3, %v3688_v59  ;;  %v3523_v9 = vld [vmem:[%s3800_s7 + $0x2a4] ss:$8 sps:$4 sm:$0xff]   ;;  %v3528_v14 = vld [vmem:[%s3800_s7 + $0xf0] ss:$8 sps:$4 sm:$0xff]  }
  0x4e   : > { %1361 = vmatprep.subr.bf16.mxu0 %v3686_v0  ;;  %3351 = vmatprep.subr.bf16.mxu1 %v3686_v0  ;;  %297 = vst.msk [vmem:[#allocation2 + $0x90] sm:$0xff] %vm278_vm3, %v3688_v59  ;;  %298 = vst.msk [vmem:[#allocation2 + $0x98] sm:$0xff] %vm278_vm3, %v3688_v59  ;;  %v3533_v15 = vld [vmem:[%s3800_s7 + $0x2b0] ss:$8 sps:$4 sm:$0xff]   ;;  %p4224_p7 = scmp.lt.s32.totalorder %s264_s30, 11880 }
  0x4f   : > { %299 = vst.msk [vmem:[#allocation2 + $0xa0] sm:$0xff] %vm278_vm3, %v3688_v59  ;;  %300 = vst.msk [vmem:[#allocation2 + $0xa8] sm:$0xff] %vm278_vm3, %v3688_v59 }
  0x50   : > { %301 = vst.msk [vmem:[#allocation2 + $0xb0] sm:$0xff] %vm278_vm3, %v3688_v59  ;;  %302 = vst.msk [vmem:[#allocation2 + $0xb8] sm:$0xff] %vm278_vm3, %v3688_v59  ;;  %s4718_s30 = smov (!%p4224_p7, %s264_s30), 11880 }
  0x51   : > { %1362 = vmatpush1.bf16.msra.mxu0 %v3433_v10  ;;  %3361 = vmatpush1.bf16.msra.mxu1 %v3433_v10  ;;  %303 = vst.msk [vmem:[#allocation2 + $0xc0] sm:$0xff] %vm278_vm3, %v3688_v59  ;;  %304 = vst.msk [vmem:[#allocation2 + $0xc8] sm:$0xff] %vm278_vm3, %v3688_v59  ;;  %v3522_v10 = vld [vmem:[%s3800_s7 + $0xe0] ss:$8 sps:$4 sm:$0xff]   ;;  %s2944_s6 = sshll.u32 %s4718_s30, 2 }
  0x52   : > { %1363 = vmatprep.subr.bf16.mxu0 %v3686_v0  ;;  %3352 = vmatprep.subr.bf16.mxu1 %v3686_v0  ;;  %305 = vst.msk [vmem:[#allocation2 + $0xd0] sm:$0xff] %vm278_vm3, %v3688_v59  ;;  %306 = vst.msk [vmem:[#allocation2 + $0xd8] sm:$0xff] %vm278_vm3, %v3688_v59  ;;  %s4250_s9 = scalar_lea.vmem %s4706_s3, %s2944_s6 }
  0x53   : > { %307 = vst.msk [vmem:[#allocation2 + $0xe0] sm:$0xff] %vm278_vm3, %v3688_v59  ;;  %308 = vst.msk [vmem:[#allocation2 + $0xe8] sm:$0xff] %vm278_vm3, %v3688_v59 }
  0x54   : > { %309 = vst.msk [vmem:[#allocation2 + $0xf0] sm:$0xff] %vm278_vm3, %v3688_v59  ;;  %310 = vst.msk [vmem:[#allocation2 + $0xf8] sm:$0xff] %vm278_vm3, %v3688_v59 }
  0x55   : > { %1364 = vmatpush1.bf16.msra.mxu0 %v3434_v13  ;;  %3362 = vmatpush1.bf16.msra.mxu1 %v3434_v13  ;;  %311 = vst.msk [vmem:[#allocation2 + $0x100] sm:$0xff] %vm278_vm3, %v3688_v59  ;;  %312 = vst.msk [vmem:[#allocation2 + $0x108] sm:$0xff] %vm278_vm3, %v3688_v59  ;;  %v3529_v13 = vld [vmem:[%s3800_s7 + $0x2b4] ss:$8 sps:$4 sm:$0xff]  }
  0x56   : > { %1365 = vmatprep.subr.bf16.mxu0 %v3686_v0  ;;  %3353 = vmatprep.subr.bf16.mxu1 %v3686_v0  ;;  %313 = vst.msk [vmem:[#allocation2 + $0x110] sm:$0xff] %vm278_vm3, %v3688_v59  ;;  %314 = vst.msk [vmem:[#allocation2 + $0x118] sm:$0xff] %vm278_vm3, %v3688_v59  ;;  %v3507_v0 = vld [vmem:[%s3800_s7 + $0xc4] ss:$8 sps:$4 sm:$0xff]  }
  0x57   : > { %315 = vst.msk [vmem:[#allocation2 + $0x120] sm:$0xff] %vm278_vm3, %v3688_v59  ;;  %316 = vst.msk [vmem:[#allocation2 + $0x128] sm:$0xff] %vm278_vm3, %v3688_v59 }
  0x58   : > { %317 = vst.msk [vmem:[#allocation2 + $0x130] sm:$0xff] %vm278_vm3, %v3688_v59  ;;  %318 = vst.msk [vmem:[#allocation2 + $0x138] sm:$0xff] %vm278_vm3, %v3688_v59 }
  0x59   : > { %1366 = vmatpush1.bf16.msra.mxu0 %v1345_v16  ;;  %3363 = vmatpush1.bf16.msra.mxu1 %v1345_v16  ;;  %319 = vst.msk [vmem:[#allocation2 + $0x140] sm:$0xff] %vm278_vm3, %v3688_v59  ;;  %320 = vst.msk [vmem:[#allocation2 + $0x148] sm:$0xff] %vm278_vm3, %v3688_v59  ;;  %v3531_v16 = vld [vmem:[%s3800_s7 + $0x104] ss:$8 sps:$4 sm:$0xff]  }
  0x5a   : > { %321 = vst.msk [vmem:[#allocation2 + $0x150] sm:$0xff] %vm278_vm3, %v3688_v59  ;;  %322 = vst.msk [vmem:[#allocation2 + $0x158] sm:$0xff] %vm278_vm3, %v3688_v59 }
  0x5b   : > { %323 = vst.msk [vmem:[#allocation2 + $0x160] sm:$0xff] %vm278_vm3, %v3688_v59  ;;  %324 = vst.msk [vmem:[#allocation2 + $0x168] sm:$0xff] %vm278_vm3, %v3688_v59 }
  0x5c   : > { %1380 = vmatmul.mubr.bf16.vlgmr.msra.gmra.mrb[0].mxu0 %v3436_v17  ;;  %1604 = vmatmul.mubr.bf16.vlgmr.msra.gmra.mrb[0].mxu1 %v3439_v18  ;;  %325 = vst.msk [vmem:[#allocation2 + $0x170] sm:$0xff] %vm278_vm3, %v3688_v59  ;;  %326 = vst.msk [vmem:[#allocation2 + $0x178] sm:$0xff] %vm278_vm3, %v3688_v59  ;;  %v3535_v17 = vld [vmem:[%s3800_s7 + $0x2c4] ss:$8 sps:$4 sm:$0xff]   ;;  %v3534_v18 = vld [vmem:[%s3800_s7 + $0x100] ss:$8 sps:$4 sm:$0xff]  }
  0x5d   : > { %3066 = vmatprep.mubr.msk.bf16.mxu0 %vm1174_vm0, %v3442_v19  ;;  %3094 = vmatprep.mubr.msk.bf16.mxu1 %vm1174_vm0, %v3445_v20  ;;  %327 = vst.msk [vmem:[#allocation2 + $0x180] sm:$0xff] %vm278_vm3, %v3688_v59  ;;  %328 = vst.msk [vmem:[#allocation2 + $0x188] sm:$0xff] %vm278_vm3, %v3688_v59  ;;  %v3539_v19 = vld [vmem:[%s3800_s7 + $0x2c0] ss:$8 sps:$4 sm:$0xff]   ;;  %v3537_v20 = vld [vmem:[%s3800_s7 + $0x114] ss:$8 sps:$4 sm:$0xff]  }
  0x5e   : > { %329 = vst.msk [vmem:[#allocation2 + $0x190] sm:$0xff] %vm278_vm3, %v3688_v59  ;;  %330 = vst.msk [vmem:[#allocation2 + $0x198] sm:$0xff] %vm278_vm3, %v3688_v59 }
  0x5f   : > { %331 = vst.msk [vmem:[#allocation2 + $0x1a0] sm:$0xff] %vm278_vm3, %v3688_v59  ;;  %332 = vst.msk [vmem:[#allocation2 + $0x1a8] sm:$0xff] %vm278_vm3, %v3688_v59 }
  0x60   : > { %333 = vst.msk [vmem:[#allocation2 + $0x1b0] sm:$0xff] %vm278_vm3, %v3688_v59  ;;  %334 = vst.msk [vmem:[#allocation2 + $0x1b8] sm:$0xff] %vm278_vm3, %v3688_v59 }
  0x61   : > { %335 = vst.msk [vmem:[#allocation2 + $0x1c0] sm:$0xff] %vm278_vm3, %v3688_v59  ;;  %336 = vst.msk [vmem:[#allocation2 + $0x1c8] sm:$0xff] %vm278_vm3, %v3688_v59 }
  0x62   : > { %337 = vst.msk [vmem:[#allocation2 + $0x1d0] sm:$0xff] %vm278_vm3, %v3688_v59  ;;  %338 = vst.msk [vmem:[#allocation2 + $0x1d8] sm:$0xff] %vm278_vm3, %v3688_v59 }
  0x63   : > { %339 = vst.msk [vmem:[#allocation2 + $0x1e0] sm:$0xff] %vm278_vm3, %v3688_v59  ;;  %340 = vst.msk [vmem:[#allocation2 + $0x1e8] sm:$0xff] %vm278_vm3, %v3688_v59 }
  0x64   : > { %1388 = vmatmul.mubr.bf16.gmra.mrb[4].mxu0 %v3444_v21  ;;  %1612 = vmatmul.mubr.bf16.gmra.mrb[4].mxu1 %v3449_v23  ;;  %341 = vst.msk [vmem:[#allocation2 + $0x1f0] sm:$0xff] %vm278_vm3, %v3688_v59  ;;  %342 = vst.msk [vmem:[#allocation2 + $0x1f8] sm:$0xff] %vm278_vm3, %v3688_v59  ;;  %v3541_v21 = vld [vmem:[%s3800_s7 + $0x2d4] ss:$8 sps:$4 sm:$0xff]   ;;  %v3545_v23 = vld [vmem:[%s3800_s7 + $0x2d0] ss:$8 sps:$4 sm:$0xff]  }
  0x65   : > { %3067 = vmatprep.mubr.msk.bf16.mxu0 %vm1174_vm0, %v3447_v22  ;;  %3095 = vmatprep.mubr.msk.bf16.mxu1 %vm1174_vm0, %v3451_v24  ;;  %343 = vst.msk [vmem:[#allocation2 + $0x200] sm:$0xff] %vm278_vm3, %v3688_v59  ;;  %344 = vst.msk [vmem:[#allocation2 + $0x208] sm:$0xff] %vm278_vm3, %v3688_v59  ;;  %v3540_v22 = vld [vmem:[%s3800_s7 + $0x110] ss:$8 sps:$4 sm:$0xff]   ;;  %v3543_v24 = vld [vmem:[%s3800_s7 + $0x124] ss:$8 sps:$4 sm:$0xff]  }
  0x66   : > { %345 = vst.msk [vmem:[#allocation2 + $0x210] sm:$0xff] %vm278_vm3, %v3688_v59  ;;  %346 = vst.msk [vmem:[#allocation2 + $0x218] sm:$0xff] %vm278_vm3, %v3688_v59 }
  0x67   : > { %347 = vst.msk [vmem:[#allocation2 + $0x220] sm:$0xff] %vm278_vm3, %v3688_v59  ;;  %348 = vst.msk [vmem:[#allocation2 + $0x228] sm:$0xff] %vm278_vm3, %v3688_v59 }
  0x68   : > { %349 = vst.msk [vmem:[#allocation2 + $0x230] sm:$0xff] %vm278_vm3, %v3688_v59  ;;  %350 = vst.msk [vmem:[#allocation2 + $0x238] sm:$0xff] %vm278_vm3, %v3688_v59 }
  0x69   : > { %351 = vst.msk [vmem:[#allocation2 + $0x240] sm:$0xff] %vm278_vm3, %v3688_v59  ;;  %352 = vst.msk [vmem:[#allocation2 + $0x248] sm:$0xff] %vm278_vm3, %v3688_v59 }
  0x6a   : > { %353 = vst.msk [vmem:[#allocation2 + $0x250] sm:$0xff] %vm278_vm3, %v3688_v59  ;;  %354 = vst.msk [vmem:[#allocation2 + $0x258] sm:$0xff] %vm278_vm3, %v3688_v59 }
  0x6b   : > { %355 = vst.msk [vmem:[#allocation2 + $0x260] sm:$0xff] %vm278_vm3, %v3688_v59  ;;  %356 = vst.msk [vmem:[#allocation2 + $0x268] sm:$0xff] %vm278_vm3, %v3688_v59 }
  0x6c   : > { %1396 = vmatmul.mubr.bf16.gmra.mrb[8].mxu0 %v3450_v25  ;;  %1620 = vmatmul.mubr.bf16.gmra.mrb[8].mxu1 %v3455_v27  ;;  %357 = vst.msk [vmem:[#allocation2 + $0x270] sm:$0xff] %vm278_vm3, %v3688_v59  ;;  %358 = vst.msk [vmem:[#allocation2 + $0x278] sm:$0xff] %vm278_vm3, %v3688_v59  ;;  %v3547_v25 = vld [vmem:[%s3800_s7 + $0x2e4] ss:$8 sps:$4 sm:$0xff]   ;;  %v3551_v27 = vld [vmem:[%s3800_s7 + $0x2e0] ss:$8 sps:$4 sm:$0xff]  }
  0x6d   : > { %3068 = vmatprep.mubr.msk.bf16.mxu0 %vm1174_vm0, %v3453_v26  ;;  %3096 = vmatprep.mubr.msk.bf16.mxu1 %vm1174_vm0, %v3457_v28  ;;  %359 = vst.msk [vmem:[#allocation2 + $0x280] sm:$0xff] %vm278_vm3, %v3688_v59  ;;  %360 = vst.msk [vmem:[#allocation2 + $0x288] sm:$0xff] %vm278_vm3, %v3688_v59  ;;  %v3546_v26 = vld [vmem:[%s3800_s7 + $0x120] ss:$8 sps:$4 sm:$0xff]   ;;  %v3549_v28 = vld [vmem:[%s3800_s7 + $0x134] ss:$8 sps:$4 sm:$0xff]  }
  0x6e   : > { %361 = vst.msk [vmem:[#allocation2 + $0x290] sm:$0xff] %vm278_vm3, %v3688_v59  ;;  %362 = vst.msk [vmem:[#allocation2 + $0x298] sm:$0xff] %vm278_vm3, %v3688_v59 }
  0x6f   : > { %363 = vst.msk [vmem:[#allocation2 + $0x2a0] sm:$0xff] %vm278_vm3, %v3688_v59  ;;  %364 = vst.msk [vmem:[#allocation2 + $0x2a8] sm:$0xff] %vm278_vm3, %v3688_v59 }
  0x70   : > { %365 = vst.msk [vmem:[#allocation2 + $0x2b0] sm:$0xff] %vm278_vm3, %v3688_v59  ;;  %366 = vst.msk [vmem:[#allocation2 + $0x2b8] sm:$0xff] %vm278_vm3, %v3688_v59 }
  0x71   : > { %367 = vst.msk [vmem:[#allocation2 + $0x2c0] sm:$0xff] %vm278_vm3, %v3688_v59  ;;  %368 = vst.msk [vmem:[#allocation2 + $0x2c8] sm:$0xff] %vm278_vm3, %v3688_v59 }
  0x72   : > { %369 = vst.msk [vmem:[#allocation2 + $0x2d0] sm:$0xff] %vm278_vm3, %v3688_v59  ;;  %370 = vst.msk [vmem:[#allocation2 + $0x2d8] sm:$0xff] %vm278_vm3, %v3688_v59 }
  0x73   : > { %371 = vst.msk [vmem:[#allocation2 + $0x2e0] sm:$0xff] %vm278_vm3, %v3688_v59  ;;  %372 = vst.msk [vmem:[#allocation2 + $0x2e8] sm:$0xff] %vm278_vm3, %v3688_v59 }
  0x74   : > { %1404 = vmatmul.mubr.bf16.gmra.mrb[12].mxu0 %v3456_v29  ;;  %1628 = vmatmul.mubr.bf16.gmra.mrb[12].mxu1 %v3461_v31  ;;  %373 = vst.msk [vmem:[#allocation2 + $0x2f0] sm:$0xff] %vm278_vm3, %v3688_v59  ;;  %374 = vst.msk [vmem:[#allocation2 + $0x2f8] sm:$0xff] %vm278_vm3, %v3688_v59  ;;  %v3553_v29 = vld [vmem:[%s3800_s7 + $0x2f4] ss:$8 sps:$4 sm:$0xff]   ;;  %v3557_v31 = vld [vmem:[%s3800_s7 + $0x2f0] ss:$8 sps:$4 sm:$0xff]  }
  0x75   : > { %3069 = vmatprep.mubr.msk.bf16.mxu0 %vm1174_vm0, %v3459_v30  ;;  %3097 = vmatprep.mubr.msk.bf16.mxu1 %vm1174_vm0, %v3463_v32  ;;  %375 = vst.msk [vmem:[#allocation2 + $0x300] sm:$0xff] %vm278_vm3, %v3688_v59  ;;  %376 = vst.msk [vmem:[#allocation2 + $0x308] sm:$0xff] %vm278_vm3, %v3688_v59  ;;  %v3552_v30 = vld [vmem:[%s3800_s7 + $0x130] ss:$8 sps:$4 sm:$0xff]   ;;  %v3555_v32 = vld [vmem:[%s3800_s7 + $0x144] ss:$8 sps:$4 sm:$0xff]  }
  0x76   : > { %377 = vst.msk [vmem:[#allocation2 + $0x310] sm:$0xff] %vm278_vm3, %v3688_v59  ;;  %378 = vst.msk [vmem:[#allocation2 + $0x318] sm:$0xff] %vm278_vm3, %v3688_v59 }
  0x77   : > { %379 = vst.msk [vmem:[#allocation2 + $0x320] sm:$0xff] %vm278_vm3, %v3688_v59  ;;  %380 = vst.msk [vmem:[#allocation2 + $0x328] sm:$0xff] %vm278_vm3, %v3688_v59 }
  0x78   : > { %381 = vst.msk [vmem:[#allocation2 + $0x330] sm:$0xff] %vm278_vm3, %v3688_v59  ;;  %382 = vst.msk [vmem:[#allocation2 + $0x338] sm:$0xff] %vm278_vm3, %v3688_v59 }
  0x79   : > { %383 = vst.msk [vmem:[#allocation2 + $0x340] sm:$0xff] %vm278_vm3, %v3688_v59  ;;  %384 = vst.msk [vmem:[#allocation2 + $0x348] sm:$0xff] %vm278_vm3, %v3688_v59 }
  0x7a   : > { %385 = vst.msk [vmem:[#allocation2 + $0x350] sm:$0xff] %vm278_vm3, %v3688_v59  ;;  %386 = vst.msk [vmem:[#allocation2 + $0x358] sm:$0xff] %vm278_vm3, %v3688_v59 }
  0x7b   : > { %387 = vst.msk [vmem:[#allocation2 + $0x360] sm:$0xff] %vm278_vm3, %v3688_v59  ;;  %v3594_v59 = vld [vmem:[%s3800_s7 + $0x1a0] ss:$8 sps:$4 sm:$0xff]  }
  0x7c   : > { %1412 = vmatmul.mubr.bf16.gmra.mrb[16].mxu0 %v3462_v33  ;;  %1636 = vmatmul.mubr.bf16.gmra.mrb[16].mxu1 %v3467_v34  ;;  %v3559_v33 = vld [vmem:[%s3800_s7 + $0x304] ss:$8 sps:$4 sm:$0xff]   ;;  %v3558_v34 = vld [vmem:[%s3800_s7 + $0x140] ss:$8 sps:$4 sm:$0xff]  }
  0x7d   : > { %3070 = vmatprep.mubr.msk.bf16.mxu0 %vm1174_vm0, %v3465_v35  ;;  %3098 = vmatprep.mubr.msk.bf16.mxu1 %vm1174_vm0, %v3469_v36  ;;  %v3563_v35 = vld [vmem:[%s3800_s7 + $0x300] ss:$8 sps:$4 sm:$0xff]   ;;  %v3561_v36 = vld [vmem:[%s3800_s7 + $0x154] ss:$8 sps:$4 sm:$0xff]  }
  0x84   : > { %1420 = vmatmul.mubr.bf16.gmra.mrb[20].mxu0 %v3468_v37  ;;  %1644 = vmatmul.mubr.bf16.gmra.mrb[20].mxu1 %v3473_v38  ;;  %v3565_v37 = vld [vmem:[%s3800_s7 + $0x314] ss:$8 sps:$4 sm:$0xff]   ;;  %v3564_v38 = vld [vmem:[%s3800_s7 + $0x150] ss:$8 sps:$4 sm:$0xff]  }
  0x85   : > { %3071 = vmatprep.mubr.msk.bf16.mxu0 %vm1174_vm0, %v3471_v39  ;;  %3099 = vmatprep.mubr.msk.bf16.mxu1 %vm1174_vm0, %v3475_v40  ;;  %v3569_v39 = vld [vmem:[%s3800_s7 + $0x310] ss:$8 sps:$4 sm:$0xff]   ;;  %v3567_v40 = vld [vmem:[%s3800_s7 + $0x164] ss:$8 sps:$4 sm:$0xff]  }
  0x8c   : > { %1428 = vmatmul.mubr.bf16.gmra.mrb[24].mxu0 %v3474_v41  ;;  %1652 = vmatmul.mubr.bf16.gmra.mrb[24].mxu1 %v3479_v42  ;;  %v3571_v41 = vld [vmem:[%s3800_s7 + $0x324] ss:$8 sps:$4 sm:$0xff]   ;;  %v3570_v42 = vld [vmem:[%s3800_s7 + $0x160] ss:$8 sps:$4 sm:$0xff]  }
  0x8d   : > { %3072 = vmatprep.mubr.msk.bf16.mxu0 %vm1174_vm0, %v3477_v43  ;;  %3100 = vmatprep.mubr.msk.bf16.mxu1 %vm1174_vm0, %v3481_v44  ;;  %v3575_v43 = vld [vmem:[%s3800_s7 + $0x320] ss:$8 sps:$4 sm:$0xff]   ;;  %v3573_v44 = vld [vmem:[%s3800_s7 + $0x174] ss:$8 sps:$4 sm:$0xff]  }
  0x94   : > { %1436 = vmatmul.mubr.bf16.gmra.mrb[28].mxu0 %v3480_v45  ;;  %1660 = vmatmul.mubr.bf16.gmra.mrb[28].mxu1 %v3485_v46  ;;  %v3577_v45 = vld [vmem:[%s3800_s7 + $0x334] ss:$8 sps:$4 sm:$0xff]   ;;  %v3576_v46 = vld [vmem:[%s3800_s7 + $0x170] ss:$8 sps:$4 sm:$0xff]  }
  0x95   : > { %3073 = vmatprep.mubr.msk.bf16.mxu0 %vm1174_vm0, %v3483_v47  ;;  %3101 = vmatprep.mubr.msk.bf16.mxu1 %vm1174_vm0, %v3487_v48  ;;  %v3581_v47 = vld [vmem:[%s3800_s7 + $0x330] ss:$8 sps:$4 sm:$0xff]   ;;  %v3579_v48 = vld [vmem:[%s3800_s7 + $0x184] ss:$8 sps:$4 sm:$0xff]  }
  0x9c   : > { %1444 = vmatmul.mubr.bf16.gmra.mrb[32].mxu0 %v3486_v49  ;;  %1668 = vmatmul.mubr.bf16.gmra.mrb[32].mxu1 %v3491_v50  ;;  %v3583_v49 = vld [vmem:[%s3800_s7 + $0x344] ss:$8 sps:$4 sm:$0xff]   ;;  %v3582_v50 = vld [vmem:[%s3800_s7 + $0x180] ss:$8 sps:$4 sm:$0xff]  }
  0x9d   : > { %3074 = vmatprep.mubr.msk.bf16.mxu0 %vm1174_vm0, %v3489_v51  ;;  %3102 = vmatprep.mubr.msk.bf16.mxu1 %vm1174_vm0, %v3493_v52  ;;  %v3587_v51 = vld [vmem:[%s3800_s7 + $0x340] ss:$8 sps:$4 sm:$0xff]   ;;  %v3585_v52 = vld [vmem:[%s3800_s7 + $0x194] ss:$8 sps:$4 sm:$0xff]  }
  0xa4   : > { %1452 = vmatmul.mubr.bf16.gmra.mrb[36].mxu0 %v3492_v53  ;;  %1676 = vmatmul.mubr.bf16.gmra.mrb[36].mxu1 %v3497_v54  ;;  %v3589_v53 = vld [vmem:[%s3800_s7 + $0x354] ss:$8 sps:$4 sm:$0xff]   ;;  %v605_v54 = vld [vmem:[%s3800_s7 + $0x360] sm:$0xff] }
  0xa5   : > { %3075 = vmatprep.mubr.msk.bf16.mxu0 %vm1174_vm0, %v3495_v55  ;;  %3103 = vmatprep.mubr.msk.bf16.mxu1 %vm1174_vm0, %v3499_v56  ;;  %v3588_v55 = vld [vmem:[%s3800_s7 + $0x190] ss:$8 sps:$4 sm:$0xff]  }
  0xa6   : > { %v3593_v56 = vld [vmem:[%s3800_s7 + $0x350] ss:$8 sps:$4 sm:$0xff]  }
  0xac   : > { %1460 = vmatmul.mubr.bf16.gmra.mrb[40].mxu0 %v3901_v57  ;;  %1684 = vmatmul.mubr.bf16.gmra.mrb[40].mxu1 %v3904_v58  ;;  %v3591_v57 = vld [vmem:[%s3800_s7 + $0x1a4] ss:$8 sps:$4 sm:$0xff]   ;;  %v3054_v58 = vcombine.high %v605_v54, %v605_v54 }
  0xad   : > { %3076 = vmatprep.mubr.msk.bf16.mxu0 %vm1174_vm0, %v3501_v60  ;;  %3104 = vmatprep.mubr.msk.bf16.mxu1 %vm1174_vm0, %v3505_v61  ;;  %v3053_v60 = vcombine.low %v605_v54, %v605_v54  ;;  %v3596_v61 = vld [vmem:[%s3800_s7 + $0x1b4] ss:$8 sps:$4 sm:$0xff]  }
  0xb4   : > { %1468 = vmatmul.mubr.bf16.gmra.mrb[44].mxu0 %v3504_v62  ;;  %1692 = vmatmul.mubr.bf16.gmra.mrb[44].mxu1 %v3509_v63  ;;  %v388_v62 = vld [vmem:[#allocation2] sm:$0xff] }
  0xb5   : > { %3077 = vmatprep.mubr.msk.bf16.mxu0 %vm1174_vm0, %v3507_v0  ;;  %3105 = vmatprep.mubr.msk.bf16.mxu1 %vm1174_vm0, %v3511_v1  ;;  %v444_v63 = vld [vmem:[#allocation2 + $0x1c0] sm:$0xff]  ;;  %v389_v1 = vld [vmem:[#allocation2 + $0x8] sm:$0xff] }
  0xbc   : > { %1476 = vmatmul.mubr.bf16.gmra.mrb[48].mxu0 %v3510_v2  ;;  %1700 = vmatmul.mubr.bf16.gmra.mrb[48].mxu1 %v3515_v3  ;;  %v445_v3 = vld [vmem:[#allocation2 + $0x1c8] sm:$0xff] }
  0xbd   : > { %3078 = vmatprep.mubr.msk.bf16.mxu0 %vm1174_vm0, %v3513_v4  ;;  %3106 = vmatprep.mubr.msk.bf16.mxu1 %vm1174_vm0, %v3517_v5 }
  0xc4   : > { %1484 = vmatmul.mubr.bf16.gmra.mrb[52].mxu0 %v3516_v6  ;;  %1708 = vmatmul.mubr.bf16.gmra.mrb[52].mxu1 %v3521_v7  ;;  %v3599_v6 = vld [vmem:[%s3800_s7 + $0x1b0] ss:$8 sps:$4 sm:$0xff]  }
  0xc5   : > { %3079 = vmatprep.mubr.msk.bf16.mxu0 %vm1174_vm0, %v3519_v8  ;;  %3107 = vmatprep.mubr.msk.bf16.mxu1 %vm1174_vm0, %v3523_v9 }
  0xcc   : > { %1492 = vmatmul.mubr.bf16.gmra.mrb[56].mxu0 %v3522_v10  ;;  %1716 = vmatmul.mubr.bf16.gmra.mrb[56].mxu1 %v3527_v11 }
  0xcd   : > { %3080 = vmatprep.mubr.msk.bf16.mxu0 %vm1174_vm0, %v3525_v12  ;;  %3108 = vmatprep.mubr.msk.bf16.mxu1 %vm1174_vm0, %v3529_v13 }
  0xd4   : > { %1500 = vmatmul.mubr.bf16.gmra.mrb[60].mxu0 %v3528_v14  ;;  %1724 = vmatmul.mubr.bf16.gmra.mrb[60].mxu1 %v3533_v15  ;;  %v390_v15 = vld [vmem:[#allocation2 + $0x10] sm:$0xff] }
  0xd5   : > { %3081 = vmatprep.mubr.msk.bf16.mxu0 %vm1174_vm0, %v3531_v16  ;;  %3109 = vmatprep.mubr.msk.bf16.mxu1 %vm1174_vm0, %v3535_v17  ;;  %v446_v16 = vld [vmem:[#allocation2 + $0x1d0] sm:$0xff]  ;;  %v4240_v17 = vld [vmem:[%s4705_s2] ss:$0 sm:$0xff] }
  0xdc   : > { %1508 = vmatmul.mubr.bf16.gmra.mrb[64].mxu0 %v3534_v18  ;;  %1732 = vmatmul.mubr.bf16.gmra.mrb[64].mxu1 %v3539_v19  ;;  %v391_v19 = vld [vmem:[#allocation2 + $0x18] sm:$0xff] }
  0xdd   : > { %3082 = vmatprep.mubr.msk.bf16.mxu0 %vm1174_vm0, %v3537_v20  ;;  %3110 = vmatprep.mubr.msk.bf16.mxu1 %vm1174_vm0, %v3541_v21  ;;  %v447_v21 = vld [vmem:[#allocation2 + $0x1d8] sm:$0xff] }
  0xe4   : > { %1516 = vmatmul.mubr.bf16.gmra.mrb[68].mxu0 %v3540_v22  ;;  %1740 = vmatmul.mubr.bf16.gmra.mrb[68].mxu1 %v3545_v23 }
  0xe5   : > { %3083 = vmatprep.mubr.msk.bf16.mxu0 %vm1174_vm0, %v3543_v24  ;;  %3111 = vmatprep.mubr.msk.bf16.mxu1 %vm1174_vm0, %v3547_v25 }
  0xec   : > { %1524 = vmatmul.mubr.bf16.gmra.mrb[72].mxu0 %v3546_v26  ;;  %1748 = vmatmul.mubr.bf16.gmra.mrb[72].mxu1 %v3551_v27 }
  0xed   : > { %3084 = vmatprep.mubr.msk.bf16.mxu0 %vm1174_vm0, %v3549_v28  ;;  %3112 = vmatprep.mubr.msk.bf16.mxu1 %vm1174_vm0, %v3553_v29 }
  0xf4   : > { %1532 = vmatmul.mubr.bf16.gmra.mrb[76].mxu0 %v3552_v30  ;;  %1756 = vmatmul.mubr.bf16.gmra.mrb[76].mxu1 %v3557_v31 }
  0xf5   : > { %3085 = vmatprep.mubr.msk.bf16.mxu0 %vm1174_vm0, %v3555_v32  ;;  %3113 = vmatprep.mubr.msk.bf16.mxu1 %vm1174_vm0, %v3559_v33 }
  0xfc   : > { %1540 = vmatmul.mubr.bf16.gmra.mrb[80].mxu0 %v3558_v34  ;;  %1764 = vmatmul.mubr.bf16.gmra.mrb[80].mxu1 %v3563_v35 }
  0xfd   : > { %3086 = vmatprep.mubr.msk.bf16.mxu0 %vm1174_vm0, %v3561_v36  ;;  %3114 = vmatprep.mubr.msk.bf16.mxu1 %vm1174_vm0, %v3565_v37 }
 0x104   : > { %1548 = vmatmul.mubr.bf16.gmra.mrb[84].mxu0 %v3564_v38  ;;  %1772 = vmatmul.mubr.bf16.gmra.mrb[84].mxu1 %v3569_v39 }
 0x105   : > { %3087 = vmatprep.mubr.msk.bf16.mxu0 %vm1174_vm0, %v3567_v40  ;;  %3115 = vmatprep.mubr.msk.bf16.mxu1 %vm1174_vm0, %v3571_v41 }
 0x10c   : > { %1556 = vmatmul.mubr.bf16.gmra.mrb[88].mxu0 %v3570_v42  ;;  %1780 = vmatmul.mubr.bf16.gmra.mrb[88].mxu1 %v3575_v43  ;;  %v392_v42 = vld [vmem:[#allocation2 + $0x20] sm:$0xff] }
 0x10d   : > { %3088 = vmatprep.mubr.msk.bf16.mxu0 %vm1174_vm0, %v3573_v44  ;;  %3116 = vmatprep.mubr.msk.bf16.mxu1 %vm1174_vm0, %v3577_v45  ;;  %v448_v43 = vld [vmem:[#allocation2 + $0x1e0] sm:$0xff] }
 0x114   : > { %1564 = vmatmul.mubr.bf16.gmra.mrb[92].mxu0 %v3576_v46  ;;  %1788 = vmatmul.mubr.bf16.gmra.mrb[92].mxu1 %v3581_v47  ;;  %v393_v47 = vld [vmem:[#allocation2 + $0x28] sm:$0xff] }
 0x115   : > { %3089 = vmatprep.mubr.msk.bf16.mxu0 %vm1174_vm0, %v3579_v48  ;;  %3117 = vmatprep.mubr.msk.bf16.mxu1 %vm1174_vm0, %v3583_v49  ;;  %v449_v49 = vld [vmem:[#allocation2 + $0x1e8] sm:$0xff] }
 0x11c   : > { %1572 = vmatmul.mubr.bf16.gmra.mrb[96].mxu0 %v3582_v50  ;;  %1796 = vmatmul.mubr.bf16.gmra.mrb[96].mxu1 %v3587_v51 }
 0x11d   : > { %3090 = vmatprep.mubr.msk.bf16.mxu0 %vm1174_vm0, %v3585_v52  ;;  %3118 = vmatprep.mubr.msk.bf16.mxu1 %vm1174_vm0, %v3589_v53 }
 0x124   : > { %1580 = vmatmul.mubr.bf16.gmra.mrb[100].mxu0 %v3588_v55  ;;  %1804 = vmatmul.mubr.bf16.gmra.mrb[100].mxu1 %v3593_v56 }
 0x125   : > { %3091 = vmatprep.mubr.msk.bf16.mxu0 %vm1174_vm0, %v3591_v57  ;;  %3119 = vmatprep.mubr.msk.bf16.mxu1 %vm1174_vm0, %v3054_v58 }
 0x12c   : > { %1588 = vmatmul.mubr.bf16.gmra.mrb[104].mxu0 %v3594_v59  ;;  %1812 = vmatmul.mubr.bf16.gmra.mrb[104].mxu1 %v3053_v60 }
 0x12d   : > { %3092 = vmatprep.mubr.msk.bf16.mxu0 %vm1174_vm0, %v3596_v61 }
 0x12f   : > { %v1381_v0 = vpop.f32.mrb[0].mxu0  ;;  %v1605_v2 = vpop.f32.mrb[0].mxu1 }
 0x130   : > { %v1819_v4 = vadd.f32 %v1381_v0, %v388_v62  ;;  %v1383_v5 = vpop.f32.mrb[1].mxu0  ;;  %v1875_v7 = vadd.f32 %v1605_v2, %v444_v63  ;;  %v1607_v8 = vpop.f32.mrb[1].mxu1 }
 0x131   : > { %v1384_v9 = vpop.f32.mrb[2].mxu0  ;;  %v1608_v10 = vpop.f32.mrb[2].mxu1 }
 0x132   : > { %1929 = vst.msk [vmem:[#allocation2] sm:$0xff] %vm278_vm3, %v1819_v4  ;;  %v1820_v11 = vadd.f32 %v1384_v9, %v389_v1  ;;  %v1386_v12 = vpop.f32.mrb[3].mxu0  ;;  %1985 = vst.msk [vmem:[#allocation2 + $0x1c0] sm:$0xff] %vm278_vm3, %v1875_v7  ;;  %v1876_v13 = vadd.f32 %v1608_v10, %v445_v3  ;;  %v1610_v14 = vpop.f32.mrb[3].mxu1  ;;  %v450_v7 = vld [vmem:[#allocation2 + $0x1f0] sm:$0xff] }
 0x134   : > { %1930 = vst.msk [vmem:[#allocation2 + $0x8] sm:$0xff] %vm278_vm3, %v1820_v11  ;;  %1596 = vmatmul.mubr.bf16.gmra.mrb[108].mxu0 %v3599_v6  ;;  %1986 = vst.msk [vmem:[#allocation2 + $0x1c8] sm:$0xff] %vm278_vm3, %v1876_v13  ;;  %v394_v6 = vld [vmem:[#allocation2 + $0x30] sm:$0xff]  ;;  %v395_v11 = vld [vmem:[#allocation2 + $0x38] sm:$0xff] }
 0x135   : > { %v451_v13 = vld [vmem:[#allocation2 + $0x1f8] sm:$0xff] }
 0x137   : > { %v1389_v18 = vpop.f32.mrb[4].mxu0  ;;  %v1613_v20 = vpop.f32.mrb[4].mxu1 }
 0x138   : > { %v1821_v22 = vadd.f32 %v1389_v18, %v390_v15  ;;  %v1391_v23 = vpop.f32.mrb[5].mxu0  ;;  %v1877_v24 = vadd.f32 %v1613_v20, %v446_v16  ;;  %v1615_v25 = vpop.f32.mrb[5].mxu1 }
 0x139   : > { %v2041_v26 = vld [vmem:[#allocation2] sm:$0xff]  ;;  %v1392_v28 = vpop.f32.mrb[6].mxu0  ;;  %v1616_v29 = vpop.f32.mrb[6].mxu1 }
 0x13a   : > { %v2097_v27 = vld [vmem:[#allocation2 + $0x1c0] sm:$0xff]  ;;  %v2157_v30 = vadd.f32 %v4240_v17, %v2041_v26  ;;  %1931 = vst.msk [vmem:[#allocation2 + $0x10] sm:$0xff] %vm278_vm3, %v1821_v22  ;;  %v1822_v32 = vadd.f32 %v1392_v28, %v391_v19  ;;  %v1394_v33 = vpop.f32.mrb[7].mxu0  ;;  %1987 = vst.msk [vmem:[#allocation2 + $0x1d0] sm:$0xff] %vm278_vm3, %v1877_v24  ;;  %v1878_v34 = vadd.f32 %v1616_v29, %v447_v21  ;;  %v1618_v35 = vpop.f32.mrb[7].mxu1 }
 0x13b   : > { %v2213_v31 = vadd.f32 %v4240_v17, %v2097_v27  ;;  %v2042_v36 = vld [vmem:[#allocation2 + $0x8] sm:$0xff]  ;;  %v396_v35 = vld [vmem:[#allocation2 + $0x40] sm:$0xff] }
 0x13c   : > { %v2098_v37 = vld [vmem:[#allocation2 + $0x1c8] sm:$0xff]  ;;  %v3234_v38 = vpack.c.bf16 %v2157_v30, %v2157_v30  ;;  %v2158_v39 = vadd.f32 %v4240_v17, %v2042_v36  ;;  %1932 = vst.msk [vmem:[#allocation2 + $0x18] sm:$0xff] %vm278_vm3, %v1822_v32  ;;  %1988 = vst.msk [vmem:[#allocation2 + $0x1d8] sm:$0xff] %vm278_vm3, %v1878_v34  ;;  %v452_v36 = vld [vmem:[#allocation2 + $0x200] sm:$0xff] }
 0x13d   : > { %v3290_v40 = vpack.c.bf16 %v2213_v31, %v2213_v31  ;;  %v2214_v41 = vadd.f32 %v4240_v17, %v2098_v37 }
 0x13e   : > { %2704 = vst.msk [vmem:[%s4250_s9] sm:$0xf] %vm2703_vm4, %v3234_v38  ;;  %v3235_v44 = vpack.c.bf16 %v2158_v39, %v2158_v39 }
 0x13f   : > { %2760 = vst.msk [vmem:[%s4250_s9 + $0xe0] sm:$0xf] %vm2703_vm4, %v3290_v40  ;;  %v3291_v45 = vpack.c.bf16 %v2214_v41, %v2214_v41  ;;  %v1397_v46 = vpop.f32.mrb[8].mxu0  ;;  %v1621_v48 = vpop.f32.mrb[8].mxu1  ;;  %v397_v40 = vld [vmem:[#allocation2 + $0x48] sm:$0xff] }
 0x140   : > { %2705 = vst.msk [vmem:[%s4250_s9 + $0x4] sm:$0xf] %vm2703_vm4, %v3235_v44  ;;  %v1823_v50 = vadd.f32 %v1397_v46, %v392_v42  ;;  %v1399_v51 = vpop.f32.mrb[9].mxu0  ;;  %v1879_v52 = vadd.f32 %v1621_v48, %v448_v43  ;;  %v1623_v53 = vpop.f32.mrb[9].mxu1  ;;  %v453_v42 = vld [vmem:[#allocation2 + $0x208] sm:$0xff] }
 0x141   : > { %2761 = vst.msk [vmem:[%s4250_s9 + $0xe4] sm:$0xf] %vm2703_vm4, %v3291_v45  ;;  %v2043_v54 = vld [vmem:[#allocation2 + $0x10] sm:$0xff]  ;;  %v1400_v56 = vpop.f32.mrb[10].mxu0  ;;  %v1624_v57 = vpop.f32.mrb[10].mxu1 }
 0x142   : > { %v2099_v55 = vld [vmem:[#allocation2 + $0x1d0] sm:$0xff]  ;;  %v2159_v58 = vadd.f32 %v4240_v17, %v2043_v54  ;;  %1933 = vst.msk [vmem:[#allocation2 + $0x20] sm:$0xff] %vm278_vm3, %v1823_v50  ;;  %v1824_v60 = vadd.f32 %v1400_v56, %v393_v47  ;;  %v1402_v61 = vpop.f32.mrb[11].mxu0  ;;  %1989 = vst.msk [vmem:[#allocation2 + $0x1e0] sm:$0xff] %vm278_vm3, %v1879_v52  ;;  %v1880_v62 = vadd.f32 %v1624_v57, %v449_v49  ;;  %v1626_v63 = vpop.f32.mrb[11].mxu1 }
 0x143   : > { %v2215_v59 = vadd.f32 %v4240_v17, %v2099_v55  ;;  %v2044_v0 = vld [vmem:[#allocation2 + $0x18] sm:$0xff]  ;;  %v398_v63 = vld [vmem:[#allocation2 + $0x50] sm:$0xff] }
 0x144   : > { %v2100_v1 = vld [vmem:[#allocation2 + $0x1d8] sm:$0xff]  ;;  %v3236_v2 = vpack.c.bf16 %v2159_v58, %v2159_v58  ;;  %v2160_v3 = vadd.f32 %v4240_v17, %v2044_v0  ;;  %1934 = vst.msk [vmem:[#allocation2 + $0x28] sm:$0xff] %vm278_vm3, %v1824_v60  ;;  %1990 = vst.msk [vmem:[#allocation2 + $0x1e8] sm:$0xff] %vm278_vm3, %v1880_v62  ;;  %v454_v0 = vld [vmem:[#allocation2 + $0x210] sm:$0xff] }
 0x145   : > { %v3292_v4 = vpack.c.bf16 %v2215_v59, %v2215_v59  ;;  %v2216_v5 = vadd.f32 %v4240_v17, %v2100_v1 }
 0x146   : > { %2706 = vst.msk [vmem:[%s4250_s9 + $0x8] sm:$0xf] %vm2703_vm4, %v3236_v2  ;;  %v3237_v8 = vpack.c.bf16 %v2160_v3, %v2160_v3 }
 0x147   : > { %2762 = vst.msk [vmem:[%s4250_s9 + $0xe8] sm:$0xf] %vm2703_vm4, %v3292_v4  ;;  %v3293_v9 = vpack.c.bf16 %v2216_v5, %v2216_v5  ;;  %v1405_v10 = vpop.f32.mrb[12].mxu0  ;;  %v1629_v12 = vpop.f32.mrb[12].mxu1  ;;  %v399_v4 = vld [vmem:[#allocation2 + $0x58] sm:$0xff] }
 0x148   : > { %2707 = vst.msk [vmem:[%s4250_s9 + $0xc] sm:$0xf] %vm2703_vm4, %v3237_v8  ;;  %v1825_v14 = vadd.f32 %v1405_v10, %v394_v6  ;;  %v1407_v15 = vpop.f32.mrb[13].mxu0  ;;  %v1881_v16 = vadd.f32 %v1629_v12, %v450_v7  ;;  %v1631_v18 = vpop.f32.mrb[13].mxu1  ;;  %v455_v6 = vld [vmem:[#allocation2 + $0x218] sm:$0xff] }
 0x149   : > { %2763 = vst.msk [vmem:[%s4250_s9 + $0xec] sm:$0xf] %vm2703_vm4, %v3293_v9  ;;  %v2045_v19 = vld [vmem:[#allocation2 + $0x20] sm:$0xff]  ;;  %v1408_v21 = vpop.f32.mrb[14].mxu0  ;;  %v1632_v22 = vpop.f32.mrb[14].mxu1 }
 0x14a   : > { %v2101_v20 = vld [vmem:[#allocation2 + $0x1e0] sm:$0xff]  ;;  %v2161_v23 = vadd.f32 %v4240_v17, %v2045_v19  ;;  %1935 = vst.msk [vmem:[#allocation2 + $0x30] sm:$0xff] %vm278_vm3, %v1825_v14  ;;  %v1826_v25 = vadd.f32 %v1408_v21, %v395_v11  ;;  %v1410_v26 = vpop.f32.mrb[15].mxu0  ;;  %1991 = vst.msk [vmem:[#allocation2 + $0x1f0] sm:$0xff] %vm278_vm3, %v1881_v16  ;;  %v1882_v27 = vadd.f32 %v1632_v22, %v451_v13  ;;  %v1634_v28 = vpop.f32.mrb[15].mxu1 }
 0x14b   : > { %v2217_v24 = vadd.f32 %v4240_v17, %v2101_v20  ;;  %v2046_v29 = vld [vmem:[#allocation2 + $0x28] sm:$0xff]  ;;  %v400_v28 = vld [vmem:[#allocation2 + $0x60] sm:$0xff] }
 0x14c   : > { %v2102_v30 = vld [vmem:[#allocation2 + $0x1e8] sm:$0xff]  ;;  %v3238_v31 = vpack.c.bf16 %v2161_v23, %v2161_v23  ;;  %v2162_v32 = vadd.f32 %v4240_v17, %v2046_v29  ;;  %1936 = vst.msk [vmem:[#allocation2 + $0x38] sm:$0xff] %vm278_vm3, %v1826_v25  ;;  %1992 = vst.msk [vmem:[#allocation2 + $0x1f8] sm:$0xff] %vm278_vm3, %v1882_v27  ;;  %v456_v29 = vld [vmem:[#allocation2 + $0x220] sm:$0xff] }
 0x14d   : > { %v3294_v33 = vpack.c.bf16 %v2217_v24, %v2217_v24  ;;  %v2218_v34 = vadd.f32 %v4240_v17, %v2102_v30 }
 0x14e   : > { %2708 = vst.msk [vmem:[%s4250_s9 + $0x10] sm:$0xf] %vm2703_vm4, %v3238_v31  ;;  %v3239_v37 = vpack.c.bf16 %v2162_v32, %v2162_v32 }
 0x14f   : > { %2764 = vst.msk [vmem:[%s4250_s9 + $0xf0] sm:$0xf] %vm2703_vm4, %v3294_v33  ;;  %v3295_v38 = vpack.c.bf16 %v2218_v34, %v2218_v34  ;;  %v1413_v39 = vpop.f32.mrb[16].mxu0  ;;  %v1637_v41 = vpop.f32.mrb[16].mxu1  ;;  %v401_v33 = vld [vmem:[#allocation2 + $0x68] sm:$0xff] }
 0x150   : > { %2709 = vst.msk [vmem:[%s4250_s9 + $0x14] sm:$0xf] %vm2703_vm4, %v3239_v37  ;;  %v1827_v43 = vadd.f32 %v1413_v39, %v396_v35  ;;  %v1415_v44 = vpop.f32.mrb[17].mxu0  ;;  %v1883_v45 = vadd.f32 %v1637_v41, %v452_v36  ;;  %v1639_v46 = vpop.f32.mrb[17].mxu1  ;;  %v457_v35 = vld [vmem:[#allocation2 + $0x228] sm:$0xff] }
 0x151   : > { %2765 = vst.msk [vmem:[%s4250_s9 + $0xf4] sm:$0xf] %vm2703_vm4, %v3295_v38  ;;  %v2047_v47 = vld [vmem:[#allocation2 + $0x30] sm:$0xff]  ;;  %v1416_v49 = vpop.f32.mrb[18].mxu0  ;;  %v1640_v50 = vpop.f32.mrb[18].mxu1 }
 0x152   : > { %v2103_v48 = vld [vmem:[#allocation2 + $0x1f0] sm:$0xff]  ;;  %v2163_v51 = vadd.f32 %v4240_v17, %v2047_v47  ;;  %1937 = vst.msk [vmem:[#allocation2 + $0x40] sm:$0xff] %vm278_vm3, %v1827_v43  ;;  %v1828_v53 = vadd.f32 %v1416_v49, %v397_v40  ;;  %v1418_v54 = vpop.f32.mrb[19].mxu0  ;;  %1993 = vst.msk [vmem:[#allocation2 + $0x200] sm:$0xff] %vm278_vm3, %v1883_v45  ;;  %v1884_v55 = vadd.f32 %v1640_v50, %v453_v42  ;;  %v1642_v56 = vpop.f32.mrb[19].mxu1 }
 0x153   : > { %v2219_v52 = vadd.f32 %v4240_v17, %v2103_v48  ;;  %v2048_v57 = vld [vmem:[#allocation2 + $0x38] sm:$0xff]  ;;  %v402_v56 = vld [vmem:[#allocation2 + $0x70] sm:$0xff] }
 0x154   : > { %v2104_v58 = vld [vmem:[#allocation2 + $0x1f8] sm:$0xff]  ;;  %v3240_v59 = vpack.c.bf16 %v2163_v51, %v2163_v51  ;;  %v2164_v60 = vadd.f32 %v4240_v17, %v2048_v57  ;;  %1938 = vst.msk [vmem:[#allocation2 + $0x48] sm:$0xff] %vm278_vm3, %v1828_v53  ;;  %1994 = vst.msk [vmem:[#allocation2 + $0x208] sm:$0xff] %vm278_vm3, %v1884_v55  ;;  %v458_v57 = vld [vmem:[#allocation2 + $0x230] sm:$0xff] }
 0x155   : > { %v3296_v61 = vpack.c.bf16 %v2219_v52, %v2219_v52  ;;  %v2220_v62 = vadd.f32 %v4240_v17, %v2104_v58 }
 0x156   : > { %2710 = vst.msk [vmem:[%s4250_s9 + $0x18] sm:$0xf] %vm2703_vm4, %v3240_v59  ;;  %v3241_v1 = vpack.c.bf16 %v2164_v60, %v2164_v60 }
 0x157   : > { %2766 = vst.msk [vmem:[%s4250_s9 + $0xf8] sm:$0xf] %vm2703_vm4, %v3296_v61  ;;  %v3297_v2 = vpack.c.bf16 %v2220_v62, %v2220_v62  ;;  %v1421_v3 = vpop.f32.mrb[20].mxu0  ;;  %v1645_v5 = vpop.f32.mrb[20].mxu1  ;;  %v403_v61 = vld [vmem:[#allocation2 + $0x78] sm:$0xff] }
 0x158   : > { %2711 = vst.msk [vmem:[%s4250_s9 + $0x1c] sm:$0xf] %vm2703_vm4, %v3241_v1  ;;  %v1829_v7 = vadd.f32 %v1421_v3, %v398_v63  ;;  %v1423_v8 = vpop.f32.mrb[21].mxu0  ;;  %v1885_v9 = vadd.f32 %v1645_v5, %v454_v0  ;;  %v1647_v10 = vpop.f32.mrb[21].mxu1  ;;  %v459_v63 = vld [vmem:[#allocation2 + $0x238] sm:$0xff] }
 0x159   : > { %2767 = vst.msk [vmem:[%s4250_s9 + $0xfc] sm:$0xf] %vm2703_vm4, %v3297_v2  ;;  %v2049_v11 = vld [vmem:[#allocation2 + $0x40] sm:$0xff]  ;;  %v1424_v13 = vpop.f32.mrb[22].mxu0  ;;  %v1648_v14 = vpop.f32.mrb[22].mxu1 }
 0x15a   : > { %v2105_v12 = vld [vmem:[#allocation2 + $0x200] sm:$0xff]  ;;  %v2165_v15 = vadd.f32 %v4240_v17, %v2049_v11  ;;  %1939 = vst.msk [vmem:[#allocation2 + $0x50] sm:$0xff] %vm278_vm3, %v1829_v7  ;;  %v1830_v18 = vadd.f32 %v1424_v13, %v399_v4  ;;  %v1426_v19 = vpop.f32.mrb[23].mxu0  ;;  %1995 = vst.msk [vmem:[#allocation2 + $0x210] sm:$0xff] %vm278_vm3, %v1885_v9  ;;  %v1886_v20 = vadd.f32 %v1648_v14, %v455_v6  ;;  %v1650_v21 = vpop.f32.mrb[23].mxu1 }
 0x15b   : > { %v2221_v16 = vadd.f32 %v4240_v17, %v2105_v12  ;;  %v2050_v22 = vld [vmem:[#allocation2 + $0x48] sm:$0xff]  ;;  %v404_v21 = vld [vmem:[#allocation2 + $0x80] sm:$0xff] }
 0x15c   : > { %v2106_v23 = vld [vmem:[#allocation2 + $0x208] sm:$0xff]  ;;  %v3242_v24 = vpack.c.bf16 %v2165_v15, %v2165_v15  ;;  %v2166_v25 = vadd.f32 %v4240_v17, %v2050_v22  ;;  %1940 = vst.msk [vmem:[#allocation2 + $0x58] sm:$0xff] %vm278_vm3, %v1830_v18  ;;  %1996 = vst.msk [vmem:[#allocation2 + $0x218] sm:$0xff] %vm278_vm3, %v1886_v20  ;;  %v460_v22 = vld [vmem:[#allocation2 + $0x240] sm:$0xff] }
 0x15d   : > { %v3298_v26 = vpack.c.bf16 %v2221_v16, %v2221_v16  ;;  %v2222_v27 = vadd.f32 %v4240_v17, %v2106_v23 }
 0x15e   : > { %2712 = vst.msk [vmem:[%s4250_s9 + $0x20] sm:$0xf] %vm2703_vm4, %v3242_v24  ;;  %v3243_v30 = vpack.c.bf16 %v2166_v25, %v2166_v25 }
 0x15f   : > { %2768 = vst.msk [vmem:[%s4250_s9 + $0x100] sm:$0xf] %vm2703_vm4, %v3298_v26  ;;  %v3299_v31 = vpack.c.bf16 %v2222_v27, %v2222_v27  ;;  %v1429_v32 = vpop.f32.mrb[24].mxu0  ;;  %v1653_v34 = vpop.f32.mrb[24].mxu1  ;;  %v405_v26 = vld [vmem:[#allocation2 + $0x88] sm:$0xff] }
 0x160   : > { %2713 = vst.msk [vmem:[%s4250_s9 + $0x24] sm:$0xf] %vm2703_vm4, %v3243_v30  ;;  %v1831_v36 = vadd.f32 %v1429_v32, %v400_v28  ;;  %v1431_v37 = vpop.f32.mrb[25].mxu0  ;;  %v1887_v38 = vadd.f32 %v1653_v34, %v456_v29  ;;  %v1655_v39 = vpop.f32.mrb[25].mxu1  ;;  %v461_v28 = vld [vmem:[#allocation2 + $0x248] sm:$0xff] }
 0x161   : > { %2769 = vst.msk [vmem:[%s4250_s9 + $0x104] sm:$0xf] %vm2703_vm4, %v3299_v31  ;;  %v2051_v40 = vld [vmem:[#allocation2 + $0x50] sm:$0xff]  ;;  %v1432_v42 = vpop.f32.mrb[26].mxu0  ;;  %v1656_v43 = vpop.f32.mrb[26].mxu1 }
 0x162   : > { %v2107_v41 = vld [vmem:[#allocation2 + $0x210] sm:$0xff]  ;;  %v2167_v44 = vadd.f32 %v4240_v17, %v2051_v40  ;;  %1941 = vst.msk [vmem:[#allocation2 + $0x60] sm:$0xff] %vm278_vm3, %v1831_v36  ;;  %v1832_v46 = vadd.f32 %v1432_v42, %v401_v33  ;;  %v1434_v47 = vpop.f32.mrb[27].mxu0  ;;  %1997 = vst.msk [vmem:[#allocation2 + $0x220] sm:$0xff] %vm278_vm3, %v1887_v38  ;;  %v1888_v48 = vadd.f32 %v1656_v43, %v457_v35  ;;  %v1658_v49 = vpop.f32.mrb[27].mxu1 }
 0x163   : > { %v2223_v45 = vadd.f32 %v4240_v17, %v2107_v41  ;;  %v2052_v50 = vld [vmem:[#allocation2 + $0x58] sm:$0xff]  ;;  %v406_v49 = vld [vmem:[#allocation2 + $0x90] sm:$0xff] }
 0x164   : > { %v2108_v51 = vld [vmem:[#allocation2 + $0x218] sm:$0xff]  ;;  %v3244_v52 = vpack.c.bf16 %v2167_v44, %v2167_v44  ;;  %v2168_v53 = vadd.f32 %v4240_v17, %v2052_v50  ;;  %1942 = vst.msk [vmem:[#allocation2 + $0x68] sm:$0xff] %vm278_vm3, %v1832_v46  ;;  %1998 = vst.msk [vmem:[#allocation2 + $0x228] sm:$0xff] %vm278_vm3, %v1888_v48  ;;  %v462_v50 = vld [vmem:[#allocation2 + $0x250] sm:$0xff] }
 0x165   : > { %v3300_v54 = vpack.c.bf16 %v2223_v45, %v2223_v45  ;;  %v2224_v55 = vadd.f32 %v4240_v17, %v2108_v51 }
 0x166   : > { %2714 = vst.msk [vmem:[%s4250_s9 + $0x28] sm:$0xf] %vm2703_vm4, %v3244_v52  ;;  %v3245_v58 = vpack.c.bf16 %v2168_v53, %v2168_v53 }
 0x167   : > { %2770 = vst.msk [vmem:[%s4250_s9 + $0x108] sm:$0xf] %vm2703_vm4, %v3300_v54  ;;  %v3301_v59 = vpack.c.bf16 %v2224_v55, %v2224_v55  ;;  %v1437_v60 = vpop.f32.mrb[28].mxu0  ;;  %v1661_v62 = vpop.f32.mrb[28].mxu1  ;;  %v407_v54 = vld [vmem:[#allocation2 + $0x98] sm:$0xff] }
 0x168   : > { %2715 = vst.msk [vmem:[%s4250_s9 + $0x2c] sm:$0xf] %vm2703_vm4, %v3245_v58  ;;  %v1833_v0 = vadd.f32 %v1437_v60, %v402_v56  ;;  %v1439_v1 = vpop.f32.mrb[29].mxu0  ;;  %v1889_v2 = vadd.f32 %v1661_v62, %v458_v57  ;;  %v1663_v3 = vpop.f32.mrb[29].mxu1  ;;  %v463_v56 = vld [vmem:[#allocation2 + $0x258] sm:$0xff] }
 0x169   : > { %2771 = vst.msk [vmem:[%s4250_s9 + $0x10c] sm:$0xf] %vm2703_vm4, %v3301_v59  ;;  %v2053_v4 = vld [vmem:[#allocation2 + $0x60] sm:$0xff]  ;;  %v1440_v6 = vpop.f32.mrb[30].mxu0  ;;  %v1664_v7 = vpop.f32.mrb[30].mxu1 }
 0x16a   : > { %v2109_v5 = vld [vmem:[#allocation2 + $0x220] sm:$0xff]  ;;  %v2169_v8 = vadd.f32 %v4240_v17, %v2053_v4  ;;  %1943 = vst.msk [vmem:[#allocation2 + $0x70] sm:$0xff] %vm278_vm3, %v1833_v0  ;;  %v1834_v10 = vadd.f32 %v1440_v6, %v403_v61  ;;  %v1442_v11 = vpop.f32.mrb[31].mxu0  ;;  %1999 = vst.msk [vmem:[#allocation2 + $0x230] sm:$0xff] %vm278_vm3, %v1889_v2  ;;  %v1890_v12 = vadd.f32 %v1664_v7, %v459_v63  ;;  %v1666_v13 = vpop.f32.mrb[31].mxu1 }
 0x16b   : > { %v2225_v9 = vadd.f32 %v4240_v17, %v2109_v5  ;;  %v2054_v14 = vld [vmem:[#allocation2 + $0x68] sm:$0xff]  ;;  %v408_v13 = vld [vmem:[#allocation2 + $0xa0] sm:$0xff] }
 0x16c   : > { %v2110_v15 = vld [vmem:[#allocation2 + $0x228] sm:$0xff]  ;;  %v3246_v16 = vpack.c.bf16 %v2169_v8, %v2169_v8  ;;  %v2170_v18 = vadd.f32 %v4240_v17, %v2054_v14  ;;  %1944 = vst.msk [vmem:[#allocation2 + $0x78] sm:$0xff] %vm278_vm3, %v1834_v10  ;;  %2000 = vst.msk [vmem:[#allocation2 + $0x238] sm:$0xff] %vm278_vm3, %v1890_v12  ;;  %v464_v14 = vld [vmem:[#allocation2 + $0x260] sm:$0xff] }
 0x16d   : > { %v3302_v19 = vpack.c.bf16 %v2225_v9, %v2225_v9  ;;  %v2226_v20 = vadd.f32 %v4240_v17, %v2110_v15 }
 0x16e   : > { %2716 = vst.msk [vmem:[%s4250_s9 + $0x30] sm:$0xf] %vm2703_vm4, %v3246_v16  ;;  %v3247_v23 = vpack.c.bf16 %v2170_v18, %v2170_v18 }
 0x16f   : > { %2772 = vst.msk [vmem:[%s4250_s9 + $0x110] sm:$0xf] %vm2703_vm4, %v3302_v19  ;;  %v3303_v24 = vpack.c.bf16 %v2226_v20, %v2226_v20  ;;  %v1445_v25 = vpop.f32.mrb[32].mxu0  ;;  %v1669_v27 = vpop.f32.mrb[32].mxu1  ;;  %v409_v19 = vld [vmem:[#allocation2 + $0xa8] sm:$0xff] }
 0x170   : > { %2717 = vst.msk [vmem:[%s4250_s9 + $0x34] sm:$0xf] %vm2703_vm4, %v3247_v23  ;;  %v1835_v29 = vadd.f32 %v1445_v25, %v404_v21  ;;  %v1447_v30 = vpop.f32.mrb[33].mxu0  ;;  %v1891_v31 = vadd.f32 %v1669_v27, %v460_v22  ;;  %v1671_v32 = vpop.f32.mrb[33].mxu1  ;;  %v465_v21 = vld [vmem:[#allocation2 + $0x268] sm:$0xff] }
 0x171   : > { %2773 = vst.msk [vmem:[%s4250_s9 + $0x114] sm:$0xf] %vm2703_vm4, %v3303_v24  ;;  %v2055_v33 = vld [vmem:[#allocation2 + $0x70] sm:$0xff]  ;;  %v1448_v35 = vpop.f32.mrb[34].mxu0  ;;  %v1672_v36 = vpop.f32.mrb[34].mxu1 }
 0x172   : > { %v2111_v34 = vld [vmem:[#allocation2 + $0x230] sm:$0xff]  ;;  %v2171_v37 = vadd.f32 %v4240_v17, %v2055_v33  ;;  %1945 = vst.msk [vmem:[#allocation2 + $0x80] sm:$0xff] %vm278_vm3, %v1835_v29  ;;  %v1836_v39 = vadd.f32 %v1448_v35, %v405_v26  ;;  %v1450_v40 = vpop.f32.mrb[35].mxu0  ;;  %2001 = vst.msk [vmem:[#allocation2 + $0x240] sm:$0xff] %vm278_vm3, %v1891_v31  ;;  %v1892_v41 = vadd.f32 %v1672_v36, %v461_v28  ;;  %v1674_v42 = vpop.f32.mrb[35].mxu1 }
 0x173   : > { %v2227_v38 = vadd.f32 %v4240_v17, %v2111_v34  ;;  %v2056_v43 = vld [vmem:[#allocation2 + $0x78] sm:$0xff]  ;;  %v410_v42 = vld [vmem:[#allocation2 + $0xb0] sm:$0xff] }
 0x174   : > { %v2112_v44 = vld [vmem:[#allocation2 + $0x238] sm:$0xff]  ;;  %v3248_v45 = vpack.c.bf16 %v2171_v37, %v2171_v37  ;;  %v2172_v46 = vadd.f32 %v4240_v17, %v2056_v43  ;;  %1946 = vst.msk [vmem:[#allocation2 + $0x88] sm:$0xff] %vm278_vm3, %v1836_v39  ;;  %2002 = vst.msk [vmem:[#allocation2 + $0x248] sm:$0xff] %vm278_vm3, %v1892_v41  ;;  %v466_v43 = vld [vmem:[#allocation2 + $0x270] sm:$0xff] }
 0x175   : > { %v3304_v47 = vpack.c.bf16 %v2227_v38, %v2227_v38  ;;  %v2228_v48 = vadd.f32 %v4240_v17, %v2112_v44 }
 0x176   : > { %2718 = vst.msk [vmem:[%s4250_s9 + $0x38] sm:$0xf] %vm2703_vm4, %v3248_v45  ;;  %v3249_v51 = vpack.c.bf16 %v2172_v46, %v2172_v46 }
 0x177   : > { %2774 = vst.msk [vmem:[%s4250_s9 + $0x118] sm:$0xf] %vm2703_vm4, %v3304_v47  ;;  %v3305_v52 = vpack.c.bf16 %v2228_v48, %v2228_v48  ;;  %v1453_v53 = vpop.f32.mrb[36].mxu0  ;;  %v1677_v55 = vpop.f32.mrb[36].mxu1  ;;  %v411_v47 = vld [vmem:[#allocation2 + $0xb8] sm:$0xff] }
 0x178   : > { %2719 = vst.msk [vmem:[%s4250_s9 + $0x3c] sm:$0xf] %vm2703_vm4, %v3249_v51  ;;  %v1837_v57 = vadd.f32 %v1453_v53, %v406_v49  ;;  %v1455_v58 = vpop.f32.mrb[37].mxu0  ;;  %v1893_v59 = vadd.f32 %v1677_v55, %v462_v50  ;;  %v1679_v60 = vpop.f32.mrb[37].mxu1  ;;  %v467_v49 = vld [vmem:[#allocation2 + $0x278] sm:$0xff] }
 0x179   : > { %2775 = vst.msk [vmem:[%s4250_s9 + $0x11c] sm:$0xf] %vm2703_vm4, %v3305_v52  ;;  %v2057_v61 = vld [vmem:[#allocation2 + $0x80] sm:$0xff]  ;;  %v1456_v63 = vpop.f32.mrb[38].mxu0  ;;  %v1680_v0 = vpop.f32.mrb[38].mxu1 }
 0x17a   : > { %v2113_v62 = vld [vmem:[#allocation2 + $0x240] sm:$0xff]  ;;  %v2173_v1 = vadd.f32 %v4240_v17, %v2057_v61  ;;  %1947 = vst.msk [vmem:[#allocation2 + $0x90] sm:$0xff] %vm278_vm3, %v1837_v57  ;;  %v1838_v3 = vadd.f32 %v1456_v63, %v407_v54  ;;  %v1458_v4 = vpop.f32.mrb[39].mxu0  ;;  %2003 = vst.msk [vmem:[#allocation2 + $0x250] sm:$0xff] %vm278_vm3, %v1893_v59  ;;  %v1894_v5 = vadd.f32 %v1680_v0, %v463_v56  ;;  %v1682_v6 = vpop.f32.mrb[39].mxu1 }
 0x17b   : > { %v2229_v2 = vadd.f32 %v4240_v17, %v2113_v62  ;;  %v2058_v7 = vld [vmem:[#allocation2 + $0x88] sm:$0xff]  ;;  %v412_v6 = vld [vmem:[#allocation2 + $0xc0] sm:$0xff] }
 0x17c   : > { %v2114_v8 = vld [vmem:[#allocation2 + $0x248] sm:$0xff]  ;;  %v3250_v9 = vpack.c.bf16 %v2173_v1, %v2173_v1  ;;  %v2174_v10 = vadd.f32 %v4240_v17, %v2058_v7  ;;  %1948 = vst.msk [vmem:[#allocation2 + $0x98] sm:$0xff] %vm278_vm3, %v1838_v3  ;;  %2004 = vst.msk [vmem:[#allocation2 + $0x258] sm:$0xff] %vm278_vm3, %v1894_v5  ;;  %v468_v7 = vld [vmem:[#allocation2 + $0x280] sm:$0xff] }
 0x17d   : > { %v3306_v11 = vpack.c.bf16 %v2229_v2, %v2229_v2  ;;  %v2230_v12 = vadd.f32 %v4240_v17, %v2114_v8 }
 0x17e   : > { %2720 = vst.msk [vmem:[%s4250_s9 + $0x40] sm:$0xf] %vm2703_vm4, %v3250_v9  ;;  %v3251_v15 = vpack.c.bf16 %v2174_v10, %v2174_v10 }
 0x17f   : > { %2776 = vst.msk [vmem:[%s4250_s9 + $0x120] sm:$0xf] %vm2703_vm4, %v3306_v11  ;;  %v3307_v16 = vpack.c.bf16 %v2230_v12, %v2230_v12  ;;  %v1461_v18 = vpop.f32.mrb[40].mxu0  ;;  %v1685_v20 = vpop.f32.mrb[40].mxu1  ;;  %v413_v11 = vld [vmem:[#allocation2 + $0xc8] sm:$0xff] }
 0x180   : > { %2721 = vst.msk [vmem:[%s4250_s9 + $0x44] sm:$0xf] %vm2703_vm4, %v3251_v15  ;;  %v1839_v22 = vadd.f32 %v1461_v18, %v408_v13  ;;  %v1463_v23 = vpop.f32.mrb[41].mxu0  ;;  %v1895_v24 = vadd.f32 %v1685_v20, %v464_v14  ;;  %v1687_v25 = vpop.f32.mrb[41].mxu1  ;;  %v469_v13 = vld [vmem:[#allocation2 + $0x288] sm:$0xff] }
 0x181   : > { %2777 = vst.msk [vmem:[%s4250_s9 + $0x124] sm:$0xf] %vm2703_vm4, %v3307_v16  ;;  %v2059_v26 = vld [vmem:[#allocation2 + $0x90] sm:$0xff]  ;;  %v1464_v28 = vpop.f32.mrb[42].mxu0  ;;  %v1688_v29 = vpop.f32.mrb[42].mxu1 }
 0x182   : > { %v2115_v27 = vld [vmem:[#allocation2 + $0x250] sm:$0xff]  ;;  %v2175_v30 = vadd.f32 %v4240_v17, %v2059_v26  ;;  %1949 = vst.msk [vmem:[#allocation2 + $0xa0] sm:$0xff] %vm278_vm3, %v1839_v22  ;;  %v1840_v32 = vadd.f32 %v1464_v28, %v409_v19  ;;  %v1466_v33 = vpop.f32.mrb[43].mxu0  ;;  %2005 = vst.msk [vmem:[#allocation2 + $0x260] sm:$0xff] %vm278_vm3, %v1895_v24  ;;  %v1896_v34 = vadd.f32 %v1688_v29, %v465_v21  ;;  %v1690_v35 = vpop.f32.mrb[43].mxu1 }
 0x183   : > { %v2231_v31 = vadd.f32 %v4240_v17, %v2115_v27  ;;  %v2060_v36 = vld [vmem:[#allocation2 + $0x98] sm:$0xff]  ;;  %v414_v35 = vld [vmem:[#allocation2 + $0xd0] sm:$0xff] }
 0x184   : > { %v2116_v37 = vld [vmem:[#allocation2 + $0x258] sm:$0xff]  ;;  %v3252_v38 = vpack.c.bf16 %v2175_v30, %v2175_v30  ;;  %v2176_v39 = vadd.f32 %v4240_v17, %v2060_v36  ;;  %1950 = vst.msk [vmem:[#allocation2 + $0xa8] sm:$0xff] %vm278_vm3, %v1840_v32  ;;  %2006 = vst.msk [vmem:[#allocation2 + $0x268] sm:$0xff] %vm278_vm3, %v1896_v34  ;;  %v470_v36 = vld [vmem:[#allocation2 + $0x290] sm:$0xff] }
 0x185   : > { %v3308_v40 = vpack.c.bf16 %v2231_v31, %v2231_v31  ;;  %v2232_v41 = vadd.f32 %v4240_v17, %v2116_v37 }
 0x186   : > { %2722 = vst.msk [vmem:[%s4250_s9 + $0x48] sm:$0xf] %vm2703_vm4, %v3252_v38  ;;  %v3253_v44 = vpack.c.bf16 %v2176_v39, %v2176_v39 }
 0x187   : > { %2778 = vst.msk [vmem:[%s4250_s9 + $0x128] sm:$0xf] %vm2703_vm4, %v3308_v40  ;;  %v3309_v45 = vpack.c.bf16 %v2232_v41, %v2232_v41  ;;  %v1469_v46 = vpop.f32.mrb[44].mxu0  ;;  %v1693_v48 = vpop.f32.mrb[44].mxu1  ;;  %v415_v40 = vld [vmem:[#allocation2 + $0xd8] sm:$0xff] }
 0x188   : > { %2723 = vst.msk [vmem:[%s4250_s9 + $0x4c] sm:$0xf] %vm2703_vm4, %v3253_v44  ;;  %v1841_v50 = vadd.f32 %v1469_v46, %v410_v42  ;;  %v1471_v51 = vpop.f32.mrb[45].mxu0  ;;  %v1897_v52 = vadd.f32 %v1693_v48, %v466_v43  ;;  %v1695_v53 = vpop.f32.mrb[45].mxu1  ;;  %v471_v42 = vld [vmem:[#allocation2 + $0x298] sm:$0xff] }
 0x189   : > { %2779 = vst.msk [vmem:[%s4250_s9 + $0x12c] sm:$0xf] %vm2703_vm4, %v3309_v45  ;;  %v2061_v54 = vld [vmem:[#allocation2 + $0xa0] sm:$0xff]  ;;  %v1472_v56 = vpop.f32.mrb[46].mxu0  ;;  %v1696_v57 = vpop.f32.mrb[46].mxu1 }
 0x18a   : > { %v2117_v55 = vld [vmem:[#allocation2 + $0x260] sm:$0xff]  ;;  %v2177_v58 = vadd.f32 %v4240_v17, %v2061_v54  ;;  %1951 = vst.msk [vmem:[#allocation2 + $0xb0] sm:$0xff] %vm278_vm3, %v1841_v50  ;;  %v1842_v60 = vadd.f32 %v1472_v56, %v411_v47  ;;  %v1474_v61 = vpop.f32.mrb[47].mxu0  ;;  %2007 = vst.msk [vmem:[#allocation2 + $0x270] sm:$0xff] %vm278_vm3, %v1897_v52  ;;  %v1898_v62 = vadd.f32 %v1696_v57, %v467_v49  ;;  %v1698_v63 = vpop.f32.mrb[47].mxu1 }
 0x18b   : > { %v2233_v59 = vadd.f32 %v4240_v17, %v2117_v55  ;;  %v2062_v0 = vld [vmem:[#allocation2 + $0xa8] sm:$0xff]  ;;  %v416_v63 = vld [vmem:[#allocation2 + $0xe0] sm:$0xff] }
 0x18c   : > { %v2118_v1 = vld [vmem:[#allocation2 + $0x268] sm:$0xff]  ;;  %v3254_v2 = vpack.c.bf16 %v2177_v58, %v2177_v58  ;;  %v2178_v3 = vadd.f32 %v4240_v17, %v2062_v0  ;;  %1952 = vst.msk [vmem:[#allocation2 + $0xb8] sm:$0xff] %vm278_vm3, %v1842_v60  ;;  %2008 = vst.msk [vmem:[#allocation2 + $0x278] sm:$0xff] %vm278_vm3, %v1898_v62  ;;  %v472_v0 = vld [vmem:[#allocation2 + $0x2a0] sm:$0xff] }
 0x18d   : > { %v3310_v4 = vpack.c.bf16 %v2233_v59, %v2233_v59  ;;  %v2234_v5 = vadd.f32 %v4240_v17, %v2118_v1 }
 0x18e   : > { %2724 = vst.msk [vmem:[%s4250_s9 + $0x50] sm:$0xf] %vm2703_vm4, %v3254_v2  ;;  %v3255_v8 = vpack.c.bf16 %v2178_v3, %v2178_v3 }
 0x18f   : > { %2780 = vst.msk [vmem:[%s4250_s9 + $0x130] sm:$0xf] %vm2703_vm4, %v3310_v4  ;;  %v3311_v9 = vpack.c.bf16 %v2234_v5, %v2234_v5  ;;  %v1477_v10 = vpop.f32.mrb[48].mxu0  ;;  %v1701_v12 = vpop.f32.mrb[48].mxu1  ;;  %v417_v4 = vld [vmem:[#allocation2 + $0xe8] sm:$0xff] }
 0x190   : > { %2725 = vst.msk [vmem:[%s4250_s9 + $0x54] sm:$0xf] %vm2703_vm4, %v3255_v8  ;;  %v1843_v14 = vadd.f32 %v1477_v10, %v412_v6  ;;  %v1479_v15 = vpop.f32.mrb[49].mxu0  ;;  %v1899_v16 = vadd.f32 %v1701_v12, %v468_v7  ;;  %v1703_v18 = vpop.f32.mrb[49].mxu1  ;;  %v473_v6 = vld [vmem:[#allocation2 + $0x2a8] sm:$0xff] }
 0x191   : > { %2781 = vst.msk [vmem:[%s4250_s9 + $0x134] sm:$0xf] %vm2703_vm4, %v3311_v9  ;;  %v2063_v19 = vld [vmem:[#allocation2 + $0xb0] sm:$0xff]  ;;  %v1480_v21 = vpop.f32.mrb[50].mxu0  ;;  %v1704_v22 = vpop.f32.mrb[50].mxu1 }
 0x192   : > { %v2119_v20 = vld [vmem:[#allocation2 + $0x270] sm:$0xff]  ;;  %v2179_v23 = vadd.f32 %v4240_v17, %v2063_v19  ;;  %1953 = vst.msk [vmem:[#allocation2 + $0xc0] sm:$0xff] %vm278_vm3, %v1843_v14  ;;  %v1844_v25 = vadd.f32 %v1480_v21, %v413_v11  ;;  %v1482_v26 = vpop.f32.mrb[51].mxu0  ;;  %2009 = vst.msk [vmem:[#allocation2 + $0x280] sm:$0xff] %vm278_vm3, %v1899_v16  ;;  %v1900_v27 = vadd.f32 %v1704_v22, %v469_v13  ;;  %v1706_v28 = vpop.f32.mrb[51].mxu1 }
 0x193   : > { %v2235_v24 = vadd.f32 %v4240_v17, %v2119_v20  ;;  %v2064_v29 = vld [vmem:[#allocation2 + $0xb8] sm:$0xff]  ;;  %v418_v28 = vld [vmem:[#allocation2 + $0xf0] sm:$0xff] }
 0x194   : > { %v2120_v30 = vld [vmem:[#allocation2 + $0x278] sm:$0xff]  ;;  %v3256_v31 = vpack.c.bf16 %v2179_v23, %v2179_v23  ;;  %v2180_v32 = vadd.f32 %v4240_v17, %v2064_v29  ;;  %1954 = vst.msk [vmem:[#allocation2 + $0xc8] sm:$0xff] %vm278_vm3, %v1844_v25  ;;  %2010 = vst.msk [vmem:[#allocation2 + $0x288] sm:$0xff] %vm278_vm3, %v1900_v27  ;;  %v474_v29 = vld [vmem:[#allocation2 + $0x2b0] sm:$0xff] }
 0x195   : > { %v3312_v33 = vpack.c.bf16 %v2235_v24, %v2235_v24  ;;  %v2236_v34 = vadd.f32 %v4240_v17, %v2120_v30 }
 0x196   : > { %2726 = vst.msk [vmem:[%s4250_s9 + $0x58] sm:$0xf] %vm2703_vm4, %v3256_v31  ;;  %v3257_v37 = vpack.c.bf16 %v2180_v32, %v2180_v32 }
 0x197   : > { %2782 = vst.msk [vmem:[%s4250_s9 + $0x138] sm:$0xf] %vm2703_vm4, %v3312_v33  ;;  %v3313_v38 = vpack.c.bf16 %v2236_v34, %v2236_v34  ;;  %v1485_v39 = vpop.f32.mrb[52].mxu0  ;;  %v1709_v41 = vpop.f32.mrb[52].mxu1  ;;  %v419_v33 = vld [vmem:[#allocation2 + $0xf8] sm:$0xff] }
 0x198   : > { %2727 = vst.msk [vmem:[%s4250_s9 + $0x5c] sm:$0xf] %vm2703_vm4, %v3257_v37  ;;  %v1845_v43 = vadd.f32 %v1485_v39, %v414_v35  ;;  %v1487_v44 = vpop.f32.mrb[53].mxu0  ;;  %v1901_v45 = vadd.f32 %v1709_v41, %v470_v36  ;;  %v1711_v46 = vpop.f32.mrb[53].mxu1  ;;  %v475_v35 = vld [vmem:[#allocation2 + $0x2b8] sm:$0xff] }
 0x199   : > { %2783 = vst.msk [vmem:[%s4250_s9 + $0x13c] sm:$0xf] %vm2703_vm4, %v3313_v38  ;;  %v2065_v47 = vld [vmem:[#allocation2 + $0xc0] sm:$0xff]  ;;  %v1488_v49 = vpop.f32.mrb[54].mxu0  ;;  %v1712_v50 = vpop.f32.mrb[54].mxu1 }
 0x19a   : > { %v2121_v48 = vld [vmem:[#allocation2 + $0x280] sm:$0xff]  ;;  %v2181_v51 = vadd.f32 %v4240_v17, %v2065_v47  ;;  %1955 = vst.msk [vmem:[#allocation2 + $0xd0] sm:$0xff] %vm278_vm3, %v1845_v43  ;;  %v1846_v53 = vadd.f32 %v1488_v49, %v415_v40  ;;  %v1490_v54 = vpop.f32.mrb[55].mxu0  ;;  %2011 = vst.msk [vmem:[#allocation2 + $0x290] sm:$0xff] %vm278_vm3, %v1901_v45  ;;  %v1902_v55 = vadd.f32 %v1712_v50, %v471_v42  ;;  %v1714_v56 = vpop.f32.mrb[55].mxu1 }
 0x19b   : > { %v2237_v52 = vadd.f32 %v4240_v17, %v2121_v48  ;;  %v2066_v57 = vld [vmem:[#allocation2 + $0xc8] sm:$0xff]  ;;  %v4475_v43 = vld [vmem:[%s4705_s2] ss:$0 sm:$0xff] }
 0x19c   : > { %v2122_v58 = vld [vmem:[#allocation2 + $0x288] sm:$0xff]  ;;  %v3258_v59 = vpack.c.bf16 %v2181_v51, %v2181_v51  ;;  %v2182_v60 = vadd.f32 %v4240_v17, %v2066_v57  ;;  %1956 = vst.msk [vmem:[#allocation2 + $0xd8] sm:$0xff] %vm278_vm3, %v1846_v53  ;;  %2012 = vst.msk [vmem:[#allocation2 + $0x298] sm:$0xff] %vm278_vm3, %v1902_v55  ;;  %v420_v56 = vld [vmem:[#allocation2 + $0x100] sm:$0xff] }
 0x19d   : > { %v3314_v61 = vpack.c.bf16 %v2237_v52, %v2237_v52  ;;  %v2238_v62 = vadd.f32 %v4240_v17, %v2122_v58  ;;  %v476_v57 = vld [vmem:[#allocation2 + $0x2c0] sm:$0xff] }
 0x19e   : > { %2728 = vst.msk [vmem:[%s4250_s9 + $0x60] sm:$0xf] %vm2703_vm4, %v3258_v59  ;;  %v3259_v1 = vpack.c.bf16 %v2182_v60, %v2182_v60 }
 0x19f   : > { %2784 = vst.msk [vmem:[%s4250_s9 + $0x140] sm:$0xf] %vm2703_vm4, %v3314_v61  ;;  %v3315_v2 = vpack.c.bf16 %v2238_v62, %v2238_v62  ;;  %v1493_v3 = vpop.f32.mrb[56].mxu0  ;;  %v1717_v5 = vpop.f32.mrb[56].mxu1  ;;  %v421_v61 = vld [vmem:[#allocation2 + $0x108] sm:$0xff] }
 0x1a0   : > { %2729 = vst.msk [vmem:[%s4250_s9 + $0x64] sm:$0xf] %vm2703_vm4, %v3259_v1  ;;  %v1847_v7 = vadd.f32 %v1493_v3, %v416_v63  ;;  %v1495_v8 = vpop.f32.mrb[57].mxu0  ;;  %v1903_v9 = vadd.f32 %v1717_v5, %v472_v0  ;;  %v1719_v10 = vpop.f32.mrb[57].mxu1  ;;  %v477_v63 = vld [vmem:[#allocation2 + $0x2c8] sm:$0xff] }
 0x1a1   : > { %2785 = vst.msk [vmem:[%s4250_s9 + $0x144] sm:$0xf] %vm2703_vm4, %v3315_v2  ;;  %v2067_v11 = vld [vmem:[#allocation2 + $0xd0] sm:$0xff]  ;;  %v1496_v13 = vpop.f32.mrb[58].mxu0  ;;  %v1720_v14 = vpop.f32.mrb[58].mxu1 }
 0x1a2   : > { %v2123_v12 = vld [vmem:[#allocation2 + $0x290] sm:$0xff]  ;;  %v2183_v15 = vadd.f32 %v4240_v17, %v2067_v11  ;;  %1957 = vst.msk [vmem:[#allocation2 + $0xe0] sm:$0xff] %vm278_vm3, %v1847_v7  ;;  %v1848_v18 = vadd.f32 %v1496_v13, %v417_v4  ;;  %v1498_v19 = vpop.f32.mrb[59].mxu0  ;;  %2013 = vst.msk [vmem:[#allocation2 + $0x2a0] sm:$0xff] %vm278_vm3, %v1903_v9  ;;  %v1904_v20 = vadd.f32 %v1720_v14, %v473_v6  ;;  %v1722_v21 = vpop.f32.mrb[59].mxu1 }
 0x1a3   : > { %v2239_v16 = vadd.f32 %v4240_v17, %v2123_v12  ;;  %v2068_v22 = vld [vmem:[#allocation2 + $0xd8] sm:$0xff]  ;;  %v422_v21 = vld [vmem:[#allocation2 + $0x110] sm:$0xff] }
 0x1a4   : > { %v2124_v23 = vld [vmem:[#allocation2 + $0x298] sm:$0xff]  ;;  %v3260_v24 = vpack.c.bf16 %v2183_v15, %v2183_v15  ;;  %v2184_v25 = vadd.f32 %v4240_v17, %v2068_v22  ;;  %1958 = vst.msk [vmem:[#allocation2 + $0xe8] sm:$0xff] %vm278_vm3, %v1848_v18  ;;  %2014 = vst.msk [vmem:[#allocation2 + $0x2a8] sm:$0xff] %vm278_vm3, %v1904_v20  ;;  %v478_v22 = vld [vmem:[#allocation2 + $0x2d0] sm:$0xff] }
 0x1a5   : > { %v3316_v26 = vpack.c.bf16 %v2239_v16, %v2239_v16  ;;  %v2240_v27 = vadd.f32 %v4240_v17, %v2124_v23 }
 0x1a6   : > { %2730 = vst.msk [vmem:[%s4250_s9 + $0x68] sm:$0xf] %vm2703_vm4, %v3260_v24  ;;  %v3261_v30 = vpack.c.bf16 %v2184_v25, %v2184_v25 }
 0x1a7   : > { %2786 = vst.msk [vmem:[%s4250_s9 + $0x148] sm:$0xf] %vm2703_vm4, %v3316_v26  ;;  %v3317_v31 = vpack.c.bf16 %v2240_v27, %v2240_v27  ;;  %v1501_v32 = vpop.f32.mrb[60].mxu0  ;;  %v1725_v34 = vpop.f32.mrb[60].mxu1  ;;  %v423_v26 = vld [vmem:[#allocation2 + $0x118] sm:$0xff] }
 0x1a8   : > { %2731 = vst.msk [vmem:[%s4250_s9 + $0x6c] sm:$0xf] %vm2703_vm4, %v3261_v30  ;;  %v1849_v17 = vadd.f32 %v1501_v32, %v418_v28  ;;  %v1503_v36 = vpop.f32.mrb[61].mxu0  ;;  %v1905_v37 = vadd.f32 %v1725_v34, %v474_v29  ;;  %v1727_v38 = vpop.f32.mrb[61].mxu1  ;;  %v479_v28 = vld [vmem:[#allocation2 + $0x2d8] sm:$0xff] }
 0x1a9   : > { %2787 = vst.msk [vmem:[%s4250_s9 + $0x14c] sm:$0xf] %vm2703_vm4, %v3317_v31  ;;  %v2069_v39 = vld [vmem:[#allocation2 + $0xe0] sm:$0xff]  ;;  %v1504_v41 = vpop.f32.mrb[62].mxu0  ;;  %v1728_v42 = vpop.f32.mrb[62].mxu1 }
 0x1aa   : > { %v2125_v40 = vld [vmem:[#allocation2 + $0x2a0] sm:$0xff]  ;;  %v2185_v44 = vadd.f32 %v4475_v43, %v2069_v39  ;;  %1959 = vst.msk [vmem:[#allocation2 + $0xf0] sm:$0xff] %vm278_vm3, %v1849_v17  ;;  %v1850_v46 = vadd.f32 %v1504_v41, %v419_v33  ;;  %v1506_v47 = vpop.f32.mrb[63].mxu0  ;;  %2015 = vst.msk [vmem:[#allocation2 + $0x2b0] sm:$0xff] %vm278_vm3, %v1905_v37  ;;  %v1906_v48 = vadd.f32 %v1728_v42, %v475_v35  ;;  %v1730_v49 = vpop.f32.mrb[63].mxu1 }
 0x1ab   : > { %v2241_v45 = vadd.f32 %v4475_v43, %v2125_v40  ;;  %v2070_v50 = vld [vmem:[#allocation2 + $0xe8] sm:$0xff]  ;;  %v424_v49 = vld [vmem:[#allocation2 + $0x120] sm:$0xff] }
 0x1ac   : > { %v2126_v51 = vld [vmem:[#allocation2 + $0x2a8] sm:$0xff]  ;;  %v3262_v52 = vpack.c.bf16 %v2185_v44, %v2185_v44  ;;  %v2186_v53 = vadd.f32 %v4475_v43, %v2070_v50  ;;  %1960 = vst.msk [vmem:[#allocation2 + $0xf8] sm:$0xff] %vm278_vm3, %v1850_v46  ;;  %2016 = vst.msk [vmem:[#allocation2 + $0x2b8] sm:$0xff] %vm278_vm3, %v1906_v48  ;;  %v480_v50 = vld [vmem:[#allocation2 + $0x2e0] sm:$0xff] }
 0x1ad   : > { %v3318_v54 = vpack.c.bf16 %v2241_v45, %v2241_v45  ;;  %v2242_v55 = vadd.f32 %v4475_v43, %v2126_v51 }
 0x1ae   : > { %2732 = vst.msk [vmem:[%s4250_s9 + $0x70] sm:$0xf] %vm2703_vm4, %v3262_v52  ;;  %v3263_v58 = vpack.c.bf16 %v2186_v53, %v2186_v53 }
 0x1af   : > { %2788 = vst.msk [vmem:[%s4250_s9 + $0x150] sm:$0xf] %vm2703_vm4, %v3318_v54  ;;  %v3319_v59 = vpack.c.bf16 %v2242_v55, %v2242_v55  ;;  %v1509_v60 = vpop.f32.mrb[64].mxu0  ;;  %v1733_v62 = vpop.f32.mrb[64].mxu1  ;;  %v425_v54 = vld [vmem:[#allocation2 + $0x128] sm:$0xff] }
 0x1b0   : > { %2733 = vst.msk [vmem:[%s4250_s9 + $0x74] sm:$0xf] %vm2703_vm4, %v3263_v58  ;;  %v1851_v0 = vadd.f32 %v1509_v60, %v420_v56  ;;  %v1511_v1 = vpop.f32.mrb[65].mxu0  ;;  %v1907_v2 = vadd.f32 %v1733_v62, %v476_v57  ;;  %v1735_v3 = vpop.f32.mrb[65].mxu1  ;;  %v481_v56 = vld [vmem:[#allocation2 + $0x2e8] sm:$0xff] }
 0x1b1   : > { %2789 = vst.msk [vmem:[%s4250_s9 + $0x154] sm:$0xf] %vm2703_vm4, %v3319_v59  ;;  %v2071_v4 = vld [vmem:[#allocation2 + $0xf0] sm:$0xff]  ;;  %v1512_v6 = vpop.f32.mrb[66].mxu0  ;;  %v1736_v7 = vpop.f32.mrb[66].mxu1 }
 0x1b2   : > { %v2127_v5 = vld [vmem:[#allocation2 + $0x2b0] sm:$0xff]  ;;  %v2187_v8 = vadd.f32 %v4475_v43, %v2071_v4  ;;  %1961 = vst.msk [vmem:[#allocation2 + $0x100] sm:$0xff] %vm278_vm3, %v1851_v0  ;;  %v1852_v10 = vadd.f32 %v1512_v6, %v421_v61  ;;  %v1514_v11 = vpop.f32.mrb[67].mxu0  ;;  %2017 = vst.msk [vmem:[#allocation2 + $0x2c0] sm:$0xff] %vm278_vm3, %v1907_v2  ;;  %v1908_v12 = vadd.f32 %v1736_v7, %v477_v63  ;;  %v1738_v13 = vpop.f32.mrb[67].mxu1 }
 0x1b3   : > { %v2243_v9 = vadd.f32 %v4475_v43, %v2127_v5  ;;  %v2072_v14 = vld [vmem:[#allocation2 + $0xf8] sm:$0xff]  ;;  %v426_v13 = vld [vmem:[#allocation2 + $0x130] sm:$0xff] }
 0x1b4   : > { %v2128_v15 = vld [vmem:[#allocation2 + $0x2b8] sm:$0xff]  ;;  %v3264_v16 = vpack.c.bf16 %v2187_v8, %v2187_v8  ;;  %v2188_v18 = vadd.f32 %v4475_v43, %v2072_v14  ;;  %1962 = vst.msk [vmem:[#allocation2 + $0x108] sm:$0xff] %vm278_vm3, %v1852_v10  ;;  %2018 = vst.msk [vmem:[#allocation2 + $0x2c8] sm:$0xff] %vm278_vm3, %v1908_v12  ;;  %v482_v14 = vld [vmem:[#allocation2 + $0x2f0] sm:$0xff] }
 0x1b5   : > { %v3320_v19 = vpack.c.bf16 %v2243_v9, %v2243_v9  ;;  %v2244_v20 = vadd.f32 %v4475_v43, %v2128_v15 }
 0x1b6   : > { %2734 = vst.msk [vmem:[%s4250_s9 + $0x78] sm:$0xf] %vm2703_vm4, %v3264_v16  ;;  %v3265_v23 = vpack.c.bf16 %v2188_v18, %v2188_v18 }
 0x1b7   : > { %2790 = vst.msk [vmem:[%s4250_s9 + $0x158] sm:$0xf] %vm2703_vm4, %v3320_v19  ;;  %v3321_v24 = vpack.c.bf16 %v2244_v20, %v2244_v20  ;;  %v1517_v25 = vpop.f32.mrb[68].mxu0  ;;  %v1741_v27 = vpop.f32.mrb[68].mxu1  ;;  %v427_v19 = vld [vmem:[#allocation2 + $0x138] sm:$0xff] }
 0x1b8   : > { %2735 = vst.msk [vmem:[%s4250_s9 + $0x7c] sm:$0xf] %vm2703_vm4, %v3265_v23  ;;  %v1853_v29 = vadd.f32 %v1517_v25, %v422_v21  ;;  %v1519_v30 = vpop.f32.mrb[69].mxu0  ;;  %v1909_v31 = vadd.f32 %v1741_v27, %v478_v22  ;;  %v1743_v32 = vpop.f32.mrb[69].mxu1  ;;  %v483_v21 = vld [vmem:[#allocation2 + $0x2f8] sm:$0xff] }
 0x1b9   : > { %2791 = vst.msk [vmem:[%s4250_s9 + $0x15c] sm:$0xf] %vm2703_vm4, %v3321_v24  ;;  %v2073_v33 = vld [vmem:[#allocation2 + $0x100] sm:$0xff]  ;;  %v1520_v35 = vpop.f32.mrb[70].mxu0  ;;  %v1744_v17 = vpop.f32.mrb[70].mxu1 }
 0x1ba   : > { %v2129_v34 = vld [vmem:[#allocation2 + $0x2c0] sm:$0xff]  ;;  %v2189_v36 = vadd.f32 %v4475_v43, %v2073_v33  ;;  %1963 = vst.msk [vmem:[#allocation2 + $0x110] sm:$0xff] %vm278_vm3, %v1853_v29  ;;  %v1854_v38 = vadd.f32 %v1520_v35, %v423_v26  ;;  %v1522_v39 = vpop.f32.mrb[71].mxu0  ;;  %2019 = vst.msk [vmem:[#allocation2 + $0x2d0] sm:$0xff] %vm278_vm3, %v1909_v31  ;;  %v1910_v40 = vadd.f32 %v1744_v17, %v479_v28  ;;  %v1746_v41 = vpop.f32.mrb[71].mxu1 }
 0x1bb   : > { %v2245_v37 = vadd.f32 %v4475_v43, %v2129_v34  ;;  %v2074_v42 = vld [vmem:[#allocation2 + $0x108] sm:$0xff]  ;;  %v428_v41 = vld [vmem:[#allocation2 + $0x140] sm:$0xff] }
 0x1bc   : > { %v2130_v44 = vld [vmem:[#allocation2 + $0x2c8] sm:$0xff]  ;;  %v3266_v45 = vpack.c.bf16 %v2189_v36, %v2189_v36  ;;  %v2190_v46 = vadd.f32 %v4475_v43, %v2074_v42  ;;  %1964 = vst.msk [vmem:[#allocation2 + $0x118] sm:$0xff] %vm278_vm3, %v1854_v38  ;;  %2020 = vst.msk [vmem:[#allocation2 + $0x2d8] sm:$0xff] %vm278_vm3, %v1910_v40  ;;  %v484_v42 = vld [vmem:[#allocation2 + $0x300] sm:$0xff] }
 0x1bd   : > { %v3322_v47 = vpack.c.bf16 %v2245_v37, %v2245_v37  ;;  %v2246_v48 = vadd.f32 %v4475_v43, %v2130_v44 }
 0x1be   : > { %2736 = vst.msk [vmem:[%s4250_s9 + $0x80] sm:$0xf] %vm2703_vm4, %v3266_v45  ;;  %v3267_v51 = vpack.c.bf16 %v2190_v46, %v2190_v46 }
 0x1bf   : > { %2792 = vst.msk [vmem:[%s4250_s9 + $0x160] sm:$0xf] %vm2703_vm4, %v3322_v47  ;;  %v3323_v52 = vpack.c.bf16 %v2246_v48, %v2246_v48  ;;  %v1525_v53 = vpop.f32.mrb[72].mxu0  ;;  %v1749_v55 = vpop.f32.mrb[72].mxu1  ;;  %v429_v47 = vld [vmem:[#allocation2 + $0x148] sm:$0xff] }
 0x1c0   : > { %2737 = vst.msk [vmem:[%s4250_s9 + $0x84] sm:$0xf] %vm2703_vm4, %v3267_v51  ;;  %v1855_v57 = vadd.f32 %v1525_v53, %v424_v49  ;;  %v1527_v58 = vpop.f32.mrb[73].mxu0  ;;  %v1911_v59 = vadd.f32 %v1749_v55, %v480_v50  ;;  %v1751_v60 = vpop.f32.mrb[73].mxu1  ;;  %v485_v49 = vld [vmem:[#allocation2 + $0x308] sm:$0xff] }
 0x1c1   : > { %2793 = vst.msk [vmem:[%s4250_s9 + $0x164] sm:$0xf] %vm2703_vm4, %v3323_v52  ;;  %v2075_v61 = vld [vmem:[#allocation2 + $0x110] sm:$0xff]  ;;  %v1528_v63 = vpop.f32.mrb[74].mxu0  ;;  %v1752_v0 = vpop.f32.mrb[74].mxu1 }
 0x1c2   : > { %v2131_v62 = vld [vmem:[#allocation2 + $0x2d0] sm:$0xff]  ;;  %v2191_v1 = vadd.f32 %v4475_v43, %v2075_v61  ;;  %1965 = vst.msk [vmem:[#allocation2 + $0x120] sm:$0xff] %vm278_vm3, %v1855_v57  ;;  %v1856_v3 = vadd.f32 %v1528_v63, %v425_v54  ;;  %v1530_v4 = vpop.f32.mrb[75].mxu0  ;;  %2021 = vst.msk [vmem:[#allocation2 + $0x2e0] sm:$0xff] %vm278_vm3, %v1911_v59  ;;  %v1912_v5 = vadd.f32 %v1752_v0, %v481_v56  ;;  %v1754_v6 = vpop.f32.mrb[75].mxu1 }
 0x1c3   : > { %v2247_v2 = vadd.f32 %v4475_v43, %v2131_v62  ;;  %v2076_v7 = vld [vmem:[#allocation2 + $0x118] sm:$0xff]  ;;  %v430_v6 = vld [vmem:[#allocation2 + $0x150] sm:$0xff] }
 0x1c4   : > { %v2132_v8 = vld [vmem:[#allocation2 + $0x2d8] sm:$0xff]  ;;  %v3268_v9 = vpack.c.bf16 %v2191_v1, %v2191_v1  ;;  %v2192_v10 = vadd.f32 %v4475_v43, %v2076_v7  ;;  %1966 = vst.msk [vmem:[#allocation2 + $0x128] sm:$0xff] %vm278_vm3, %v1856_v3  ;;  %2022 = vst.msk [vmem:[#allocation2 + $0x2e8] sm:$0xff] %vm278_vm3, %v1912_v5  ;;  %v486_v7 = vld [vmem:[#allocation2 + $0x310] sm:$0xff] }
 0x1c5   : > { %v3324_v11 = vpack.c.bf16 %v2247_v2, %v2247_v2  ;;  %v2248_v12 = vadd.f32 %v4475_v43, %v2132_v8 }
 0x1c6   : > { %2738 = vst.msk [vmem:[%s4250_s9 + $0x88] sm:$0xf] %vm2703_vm4, %v3268_v9  ;;  %v3269_v15 = vpack.c.bf16 %v2192_v10, %v2192_v10 }
 0x1c7   : > { %2794 = vst.msk [vmem:[%s4250_s9 + $0x168] sm:$0xf] %vm2703_vm4, %v3324_v11  ;;  %v3325_v16 = vpack.c.bf16 %v2248_v12, %v2248_v12  ;;  %v1533_v18 = vpop.f32.mrb[76].mxu0  ;;  %v1757_v20 = vpop.f32.mrb[76].mxu1  ;;  %v431_v11 = vld [vmem:[#allocation2 + $0x158] sm:$0xff] }
 0x1c8   : > { %2739 = vst.msk [vmem:[%s4250_s9 + $0x8c] sm:$0xf] %vm2703_vm4, %v3269_v15  ;;  %v1857_v22 = vadd.f32 %v1533_v18, %v426_v13  ;;  %v1535_v23 = vpop.f32.mrb[77].mxu0  ;;  %v1913_v24 = vadd.f32 %v1757_v20, %v482_v14  ;;  %v1759_v25 = vpop.f32.mrb[77].mxu1  ;;  %v487_v13 = vld [vmem:[#allocation2 + $0x318] sm:$0xff] }
 0x1c9   : > { %2795 = vst.msk [vmem:[%s4250_s9 + $0x16c] sm:$0xf] %vm2703_vm4, %v3325_v16  ;;  %v2077_v26 = vld [vmem:[#allocation2 + $0x120] sm:$0xff]  ;;  %v1536_v28 = vpop.f32.mrb[78].mxu0  ;;  %v1760_v29 = vpop.f32.mrb[78].mxu1 }
 0x1ca   : > { %v2133_v27 = vld [vmem:[#allocation2 + $0x2e0] sm:$0xff]  ;;  %v2193_v30 = vadd.f32 %v4475_v43, %v2077_v26  ;;  %1967 = vst.msk [vmem:[#allocation2 + $0x130] sm:$0xff] %vm278_vm3, %v1857_v22  ;;  %v1858_v32 = vadd.f32 %v1536_v28, %v427_v19  ;;  %v1538_v33 = vpop.f32.mrb[79].mxu0  ;;  %2023 = vst.msk [vmem:[#allocation2 + $0x2f0] sm:$0xff] %vm278_vm3, %v1913_v24  ;;  %v1914_v34 = vadd.f32 %v1760_v29, %v483_v21  ;;  %v1762_v35 = vpop.f32.mrb[79].mxu1 }
 0x1cb   : > { %v2249_v31 = vadd.f32 %v4475_v43, %v2133_v27  ;;  %v2078_v17 = vld [vmem:[#allocation2 + $0x128] sm:$0xff]  ;;  %v432_v35 = vld [vmem:[#allocation2 + $0x160] sm:$0xff] }
 0x1cc   : > { %v2134_v36 = vld [vmem:[#allocation2 + $0x2e8] sm:$0xff]  ;;  %v3270_v37 = vpack.c.bf16 %v2193_v30, %v2193_v30  ;;  %v2194_v38 = vadd.f32 %v4475_v43, %v2078_v17  ;;  %1968 = vst.msk [vmem:[#allocation2 + $0x138] sm:$0xff] %vm278_vm3, %v1858_v32  ;;  %2024 = vst.msk [vmem:[#allocation2 + $0x2f8] sm:$0xff] %vm278_vm3, %v1914_v34  ;;  %v488_v17 = vld [vmem:[#allocation2 + $0x320] sm:$0xff] }
 0x1cd   : > { %v3326_v39 = vpack.c.bf16 %v2249_v31, %v2249_v31  ;;  %v2250_v40 = vadd.f32 %v4475_v43, %v2134_v36 }
 0x1ce   : > { %2740 = vst.msk [vmem:[%s4250_s9 + $0x90] sm:$0xf] %vm2703_vm4, %v3270_v37  ;;  %v3271_v44 = vpack.c.bf16 %v2194_v38, %v2194_v38 }
 0x1cf   : > { %2796 = vst.msk [vmem:[%s4250_s9 + $0x170] sm:$0xf] %vm2703_vm4, %v3326_v39  ;;  %v3327_v45 = vpack.c.bf16 %v2250_v40, %v2250_v40  ;;  %v1541_v46 = vpop.f32.mrb[80].mxu0  ;;  %v1765_v48 = vpop.f32.mrb[80].mxu1  ;;  %v433_v39 = vld [vmem:[#allocation2 + $0x168] sm:$0xff] }
 0x1d0   : > { %2741 = vst.msk [vmem:[%s4250_s9 + $0x94] sm:$0xf] %vm2703_vm4, %v3271_v44  ;;  %v1859_v50 = vadd.f32 %v1541_v46, %v428_v41  ;;  %v1543_v51 = vpop.f32.mrb[81].mxu0  ;;  %v1915_v52 = vadd.f32 %v1765_v48, %v484_v42  ;;  %v1767_v53 = vpop.f32.mrb[81].mxu1  ;;  %v489_v41 = vld [vmem:[#allocation2 + $0x328] sm:$0xff] }
 0x1d1   : > { %2797 = vst.msk [vmem:[%s4250_s9 + $0x174] sm:$0xf] %vm2703_vm4, %v3327_v45  ;;  %v2079_v54 = vld [vmem:[#allocation2 + $0x130] sm:$0xff]  ;;  %v1544_v56 = vpop.f32.mrb[82].mxu0  ;;  %v1768_v57 = vpop.f32.mrb[82].mxu1 }
 0x1d2   : > { %v2135_v55 = vld [vmem:[#allocation2 + $0x2f0] sm:$0xff]  ;;  %v2195_v58 = vadd.f32 %v4475_v43, %v2079_v54  ;;  %1969 = vst.msk [vmem:[#allocation2 + $0x140] sm:$0xff] %vm278_vm3, %v1859_v50  ;;  %v1860_v60 = vadd.f32 %v1544_v56, %v429_v47  ;;  %v1546_v61 = vpop.f32.mrb[83].mxu0  ;;  %2025 = vst.msk [vmem:[#allocation2 + $0x300] sm:$0xff] %vm278_vm3, %v1915_v52  ;;  %v1916_v62 = vadd.f32 %v1768_v57, %v485_v49  ;;  %v1770_v63 = vpop.f32.mrb[83].mxu1 }
 0x1d3   : > { %v2251_v59 = vadd.f32 %v4475_v43, %v2135_v55  ;;  %v2080_v0 = vld [vmem:[#allocation2 + $0x138] sm:$0xff]  ;;  %v434_v63 = vld [vmem:[#allocation2 + $0x170] sm:$0xff] }
 0x1d4   : > { %v2136_v1 = vld [vmem:[#allocation2 + $0x2f8] sm:$0xff]  ;;  %v3272_v2 = vpack.c.bf16 %v2195_v58, %v2195_v58  ;;  %v2196_v3 = vadd.f32 %v4475_v43, %v2080_v0  ;;  %1970 = vst.msk [vmem:[#allocation2 + $0x148] sm:$0xff] %vm278_vm3, %v1860_v60  ;;  %2026 = vst.msk [vmem:[#allocation2 + $0x308] sm:$0xff] %vm278_vm3, %v1916_v62  ;;  %v490_v0 = vld [vmem:[#allocation2 + $0x330] sm:$0xff] }
 0x1d5   : > { %v3328_v4 = vpack.c.bf16 %v2251_v59, %v2251_v59  ;;  %v2252_v5 = vadd.f32 %v4475_v43, %v2136_v1 }
 0x1d6   : > { %2742 = vst.msk [vmem:[%s4250_s9 + $0x98] sm:$0xf] %vm2703_vm4, %v3272_v2  ;;  %v3273_v8 = vpack.c.bf16 %v2196_v3, %v2196_v3 }
 0x1d7   : > { %2798 = vst.msk [vmem:[%s4250_s9 + $0x178] sm:$0xf] %vm2703_vm4, %v3328_v4  ;;  %v3329_v9 = vpack.c.bf16 %v2252_v5, %v2252_v5  ;;  %v1549_v10 = vpop.f32.mrb[84].mxu0  ;;  %v1773_v12 = vpop.f32.mrb[84].mxu1  ;;  %v435_v4 = vld [vmem:[#allocation2 + $0x178] sm:$0xff] }
 0x1d8   : > { %2743 = vst.msk [vmem:[%s4250_s9 + $0x9c] sm:$0xf] %vm2703_vm4, %v3273_v8  ;;  %v1861_v14 = vadd.f32 %v1549_v10, %v430_v6  ;;  %v1551_v15 = vpop.f32.mrb[85].mxu0  ;;  %v1917_v16 = vadd.f32 %v1773_v12, %v486_v7  ;;  %v1775_v18 = vpop.f32.mrb[85].mxu1  ;;  %v491_v6 = vld [vmem:[#allocation2 + $0x338] sm:$0xff] }
 0x1d9   : > { %2799 = vst.msk [vmem:[%s4250_s9 + $0x17c] sm:$0xf] %vm2703_vm4, %v3329_v9  ;;  %v2081_v19 = vld [vmem:[#allocation2 + $0x140] sm:$0xff]  ;;  %v1552_v21 = vpop.f32.mrb[86].mxu0  ;;  %v1776_v22 = vpop.f32.mrb[86].mxu1 }
 0x1da   : > { %v2137_v20 = vld [vmem:[#allocation2 + $0x300] sm:$0xff]  ;;  %v2197_v23 = vadd.f32 %v4475_v43, %v2081_v19  ;;  %1971 = vst.msk [vmem:[#allocation2 + $0x150] sm:$0xff] %vm278_vm3, %v1861_v14  ;;  %v1862_v25 = vadd.f32 %v1552_v21, %v431_v11  ;;  %v1554_v26 = vpop.f32.mrb[87].mxu0  ;;  %2027 = vst.msk [vmem:[#allocation2 + $0x310] sm:$0xff] %vm278_vm3, %v1917_v16  ;;  %v1918_v27 = vadd.f32 %v1776_v22, %v487_v13  ;;  %v1778_v28 = vpop.f32.mrb[87].mxu1 }
 0x1db   : > { %v2253_v24 = vadd.f32 %v4475_v43, %v2137_v20  ;;  %v2082_v29 = vld [vmem:[#allocation2 + $0x148] sm:$0xff]  ;;  %v436_v28 = vld [vmem:[#allocation2 + $0x180] sm:$0xff] }
 0x1dc   : > { %v2138_v30 = vld [vmem:[#allocation2 + $0x308] sm:$0xff]  ;;  %v3274_v31 = vpack.c.bf16 %v2197_v23, %v2197_v23  ;;  %v2198_v32 = vadd.f32 %v4475_v43, %v2082_v29  ;;  %1972 = vst.msk [vmem:[#allocation2 + $0x158] sm:$0xff] %vm278_vm3, %v1862_v25  ;;  %2028 = vst.msk [vmem:[#allocation2 + $0x318] sm:$0xff] %vm278_vm3, %v1918_v27  ;;  %v492_v29 = vld [vmem:[#allocation2 + $0x340] sm:$0xff] }
 0x1dd   : > { %v3330_v33 = vpack.c.bf16 %v2253_v24, %v2253_v24  ;;  %v2254_v34 = vadd.f32 %v4475_v43, %v2138_v30 }
 0x1de   : > { %2744 = vst.msk [vmem:[%s4250_s9 + $0xa0] sm:$0xf] %vm2703_vm4, %v3274_v31  ;;  %v3275_v36 = vpack.c.bf16 %v2198_v32, %v2198_v32 }
 0x1df   : > { %2800 = vst.msk [vmem:[%s4250_s9 + $0x180] sm:$0xf] %vm2703_vm4, %v3330_v33  ;;  %v3331_v37 = vpack.c.bf16 %v2254_v34, %v2254_v34  ;;  %v1557_v38 = vpop.f32.mrb[88].mxu0  ;;  %v1781_v40 = vpop.f32.mrb[88].mxu1  ;;  %v437_v33 = vld [vmem:[#allocation2 + $0x188] sm:$0xff] }
 0x1e0   : > { %2745 = vst.msk [vmem:[%s4250_s9 + $0xa4] sm:$0xf] %vm2703_vm4, %v3275_v36  ;;  %v1863_v42 = vadd.f32 %v1557_v38, %v432_v35  ;;  %v1559_v44 = vpop.f32.mrb[89].mxu0  ;;  %v1919_v45 = vadd.f32 %v1781_v40, %v488_v17  ;;  %v1783_v46 = vpop.f32.mrb[89].mxu1  ;;  %v493_v35 = vld [vmem:[#allocation2 + $0x348] sm:$0xff] }
 0x1e1   : > { %2801 = vst.msk [vmem:[%s4250_s9 + $0x184] sm:$0xf] %vm2703_vm4, %v3331_v37  ;;  %v2083_v47 = vld [vmem:[#allocation2 + $0x150] sm:$0xff]  ;;  %v1560_v49 = vpop.f32.mrb[90].mxu0  ;;  %v1784_v50 = vpop.f32.mrb[90].mxu1 }
 0x1e2   : > { %v2139_v48 = vld [vmem:[#allocation2 + $0x310] sm:$0xff]  ;;  %v2199_v51 = vadd.f32 %v4475_v43, %v2083_v47  ;;  %1973 = vst.msk [vmem:[#allocation2 + $0x160] sm:$0xff] %vm278_vm3, %v1863_v42  ;;  %v1864_v53 = vadd.f32 %v1560_v49, %v433_v39  ;;  %v1562_v54 = vpop.f32.mrb[91].mxu0  ;;  %2029 = vst.msk [vmem:[#allocation2 + $0x320] sm:$0xff] %vm278_vm3, %v1919_v45  ;;  %v1920_v55 = vadd.f32 %v1784_v50, %v489_v41  ;;  %v1786_v56 = vpop.f32.mrb[91].mxu1 }
 0x1e3   : > { %v2255_v52 = vadd.f32 %v4475_v43, %v2139_v48  ;;  %v2084_v57 = vld [vmem:[#allocation2 + $0x158] sm:$0xff]  ;;  %v438_v56 = vld [vmem:[#allocation2 + $0x190] sm:$0xff] }
 0x1e4   : > { %v2140_v58 = vld [vmem:[#allocation2 + $0x318] sm:$0xff]  ;;  %v3276_v59 = vpack.c.bf16 %v2199_v51, %v2199_v51  ;;  %v2200_v60 = vadd.f32 %v4475_v43, %v2084_v57  ;;  %1974 = vst.msk [vmem:[#allocation2 + $0x168] sm:$0xff] %vm278_vm3, %v1864_v53  ;;  %2030 = vst.msk [vmem:[#allocation2 + $0x328] sm:$0xff] %vm278_vm3, %v1920_v55  ;;  %v494_v57 = vld [vmem:[#allocation2 + $0x350] sm:$0xff] }
 0x1e5   : > { %v3332_v61 = vpack.c.bf16 %v2255_v52, %v2255_v52  ;;  %v2256_v62 = vadd.f32 %v4475_v43, %v2140_v58 }
 0x1e6   : > { %2746 = vst.msk [vmem:[%s4250_s9 + $0xa8] sm:$0xf] %vm2703_vm4, %v3276_v59  ;;  %v3277_v1 = vpack.c.bf16 %v2200_v60, %v2200_v60 }
 0x1e7   : > { %2802 = vst.msk [vmem:[%s4250_s9 + $0x188] sm:$0xf] %vm2703_vm4, %v3332_v61  ;;  %v3333_v2 = vpack.c.bf16 %v2256_v62, %v2256_v62  ;;  %v1565_v3 = vpop.f32.mrb[92].mxu0  ;;  %v1789_v5 = vpop.f32.mrb[92].mxu1  ;;  %v439_v61 = vld [vmem:[#allocation2 + $0x198] sm:$0xff] }
 0x1e8   : > { %2747 = vst.msk [vmem:[%s4250_s9 + $0xac] sm:$0xf] %vm2703_vm4, %v3277_v1  ;;  %v1865_v7 = vadd.f32 %v1565_v3, %v434_v63  ;;  %v1567_v8 = vpop.f32.mrb[93].mxu0  ;;  %v1921_v9 = vadd.f32 %v1789_v5, %v490_v0  ;;  %v1791_v10 = vpop.f32.mrb[93].mxu1  ;;  %v495_v63 = vld [vmem:[#allocation2 + $0x358] sm:$0xff] }
 0x1e9   : > { %2803 = vst.msk [vmem:[%s4250_s9 + $0x18c] sm:$0xf] %vm2703_vm4, %v3333_v2  ;;  %v2085_v11 = vld [vmem:[#allocation2 + $0x160] sm:$0xff]  ;;  %v1568_v13 = vpop.f32.mrb[94].mxu0  ;;  %v1792_v14 = vpop.f32.mrb[94].mxu1 }
 0x1ea   : > { %v2141_v12 = vld [vmem:[#allocation2 + $0x320] sm:$0xff]  ;;  %v2201_v15 = vadd.f32 %v4475_v43, %v2085_v11  ;;  %1975 = vst.msk [vmem:[#allocation2 + $0x170] sm:$0xff] %vm278_vm3, %v1865_v7  ;;  %v1866_v18 = vadd.f32 %v1568_v13, %v435_v4  ;;  %v1570_v19 = vpop.f32.mrb[95].mxu0  ;;  %2031 = vst.msk [vmem:[#allocation2 + $0x330] sm:$0xff] %vm278_vm3, %v1921_v9  ;;  %v1922_v20 = vadd.f32 %v1792_v14, %v491_v6  ;;  %v1794_v21 = vpop.f32.mrb[95].mxu1 }
 0x1eb   : > { %v2257_v16 = vadd.f32 %v4475_v43, %v2141_v12  ;;  %v2086_v22 = vld [vmem:[#allocation2 + $0x168] sm:$0xff]  ;;  %v440_v21 = vld [vmem:[#allocation2 + $0x1a0] sm:$0xff] }
 0x1ec   : > { %v2142_v23 = vld [vmem:[#allocation2 + $0x328] sm:$0xff]  ;;  %v3278_v24 = vpack.c.bf16 %v2201_v15, %v2201_v15  ;;  %v2202_v25 = vadd.f32 %v4475_v43, %v2086_v22  ;;  %1976 = vst.msk [vmem:[#allocation2 + $0x178] sm:$0xff] %vm278_vm3, %v1866_v18  ;;  %2032 = vst.msk [vmem:[#allocation2 + $0x338] sm:$0xff] %vm278_vm3, %v1922_v20  ;;  %v496_v22 = vld [vmem:[#allocation2 + $0x360] sm:$0xff] }
 0x1ed   : > { %v3334_v26 = vpack.c.bf16 %v2257_v16, %v2257_v16  ;;  %v2258_v27 = vadd.f32 %v4475_v43, %v2142_v23 }
 0x1ee   : > { %2748 = vst.msk [vmem:[%s4250_s9 + $0xb0] sm:$0xf] %vm2703_vm4, %v3278_v24  ;;  %v3279_v30 = vpack.c.bf16 %v2202_v25, %v2202_v25 }
 0x1ef   : > { %2804 = vst.msk [vmem:[%s4250_s9 + $0x190] sm:$0xf] %vm2703_vm4, %v3334_v26  ;;  %v3335_v31 = vpack.c.bf16 %v2258_v27, %v2258_v27  ;;  %v1573_v32 = vpop.f32.mrb[96].mxu0  ;;  %v1797_v34 = vpop.f32.mrb[96].mxu1  ;;  %v441_v26 = vld [vmem:[#allocation2 + $0x1a8] sm:$0xff] }
 0x1f0   : > { %2749 = vst.msk [vmem:[%s4250_s9 + $0xb4] sm:$0xf] %vm2703_vm4, %v3279_v30  ;;  %v1867_v17 = vadd.f32 %v1573_v32, %v436_v28  ;;  %v1575_v36 = vpop.f32.mrb[97].mxu0  ;;  %v1923_v37 = vadd.f32 %v1797_v34, %v492_v29  ;;  %v1799_v38 = vpop.f32.mrb[97].mxu1 }
 0x1f1   : > { %2805 = vst.msk [vmem:[%s4250_s9 + $0x194] sm:$0xf] %vm2703_vm4, %v3335_v31  ;;  %v2087_v39 = vld [vmem:[#allocation2 + $0x170] sm:$0xff]  ;;  %v1576_v41 = vpop.f32.mrb[98].mxu0  ;;  %v1800_v42 = vpop.f32.mrb[98].mxu1 }
 0x1f2   : > { %v2143_v40 = vld [vmem:[#allocation2 + $0x330] sm:$0xff]  ;;  %v2203_v44 = vadd.f32 %v4475_v43, %v2087_v39  ;;  %1977 = vst.msk [vmem:[#allocation2 + $0x180] sm:$0xff] %vm278_vm3, %v1867_v17  ;;  %v1868_v46 = vadd.f32 %v1576_v41, %v437_v33  ;;  %v1578_v47 = vpop.f32.mrb[99].mxu0  ;;  %2033 = vst.msk [vmem:[#allocation2 + $0x340] sm:$0xff] %vm278_vm3, %v1923_v37  ;;  %v1924_v48 = vadd.f32 %v1800_v42, %v493_v35  ;;  %v1802_v49 = vpop.f32.mrb[99].mxu1 }
 0x1f3   : > { %v2259_v45 = vadd.f32 %v4475_v43, %v2143_v40  ;;  %v2088_v50 = vld [vmem:[#allocation2 + $0x178] sm:$0xff]  ;;  %v442_v47 = vld [vmem:[#allocation2 + $0x1b0] sm:$0xff] }
 0x1f4   : > { %v2144_v51 = vld [vmem:[#allocation2 + $0x338] sm:$0xff]  ;;  %v3280_v52 = vpack.c.bf16 %v2203_v44, %v2203_v44  ;;  %v2204_v53 = vadd.f32 %v4475_v43, %v2088_v50  ;;  %1978 = vst.msk [vmem:[#allocation2 + $0x188] sm:$0xff] %vm278_vm3, %v1868_v46  ;;  %2034 = vst.msk [vmem:[#allocation2 + $0x348] sm:$0xff] %vm278_vm3, %v1924_v48 }
 0x1f5   : > { %v3336_v54 = vpack.c.bf16 %v2259_v45, %v2259_v45  ;;  %v2260_v55 = vadd.f32 %v4475_v43, %v2144_v51  ;;  %v443_v51 = vld [vmem:[#allocation2 + $0x1b8] sm:$0xff] }
 0x1f6   : > { %2750 = vst.msk [vmem:[%s4250_s9 + $0xb8] sm:$0xf] %vm2703_vm4, %v3280_v52  ;;  %v3281_v58 = vpack.c.bf16 %v2204_v53, %v2204_v53 }
 0x1f7   : > { %2806 = vst.msk [vmem:[%s4250_s9 + $0x198] sm:$0xf] %vm2703_vm4, %v3336_v54  ;;  %v3337_v59 = vpack.c.bf16 %v2260_v55, %v2260_v55  ;;  %v1581_v60 = vpop.f32.mrb[100].mxu0  ;;  %v1805_v62 = vpop.f32.mrb[100].mxu1 }
 0x1f8   : > { %2751 = vst.msk [vmem:[%s4250_s9 + $0xbc] sm:$0xf] %vm2703_vm4, %v3281_v58  ;;  %v1869_v0 = vadd.f32 %v1581_v60, %v438_v56  ;;  %v1583_v1 = vpop.f32.mrb[101].mxu0  ;;  %v1925_v2 = vadd.f32 %v1805_v62, %v494_v57  ;;  %v1807_v3 = vpop.f32.mrb[101].mxu1 }
 0x1f9   : > { %2807 = vst.msk [vmem:[%s4250_s9 + $0x19c] sm:$0xf] %vm2703_vm4, %v3337_v59  ;;  %v2089_v4 = vld [vmem:[#allocation2 + $0x180] sm:$0xff]  ;;  %v1584_v6 = vpop.f32.mrb[102].mxu0  ;;  %v1808_v7 = vpop.f32.mrb[102].mxu1 }
 0x1fa   : > { %v2145_v5 = vld [vmem:[#allocation2 + $0x340] sm:$0xff]  ;;  %v2205_v8 = vadd.f32 %v4475_v43, %v2089_v4  ;;  %1979 = vst.msk [vmem:[#allocation2 + $0x190] sm:$0xff] %vm278_vm3, %v1869_v0  ;;  %v1870_v10 = vadd.f32 %v1584_v6, %v439_v61  ;;  %v1586_v11 = vpop.f32.mrb[103].mxu0  ;;  %2035 = vst.msk [vmem:[#allocation2 + $0x350] sm:$0xff] %vm278_vm3, %v1925_v2  ;;  %v1926_v12 = vadd.f32 %v1808_v7, %v495_v63  ;;  %v1810_v13 = vpop.f32.mrb[103].mxu1 }
 0x1fb   : > { %v2261_v9 = vadd.f32 %v4475_v43, %v2145_v5  ;;  %v2090_v14 = vld [vmem:[#allocation2 + $0x188] sm:$0xff] }
 0x1fc   : > { %v2146_v15 = vld [vmem:[#allocation2 + $0x348] sm:$0xff]  ;;  %v3282_v16 = vpack.c.bf16 %v2205_v8, %v2205_v8  ;;  %v2206_v18 = vadd.f32 %v4475_v43, %v2090_v14  ;;  %1980 = vst.msk [vmem:[#allocation2 + $0x198] sm:$0xff] %vm278_vm3, %v1870_v10  ;;  %2036 = vst.msk [vmem:[#allocation2 + $0x358] sm:$0xff] %vm278_vm3, %v1926_v12 }
 0x1fd   : > { %v3338_v19 = vpack.c.bf16 %v2261_v9, %v2261_v9  ;;  %v2262_v20 = vadd.f32 %v4475_v43, %v2146_v15 }
 0x1fe   : > { %2752 = vst.msk [vmem:[%s4250_s9 + $0xc0] sm:$0xf] %vm2703_vm4, %v3282_v16  ;;  %v3283_v23 = vpack.c.bf16 %v2206_v18, %v2206_v18 }
 0x1ff   : > { %2808 = vst.msk [vmem:[%s4250_s9 + $0x1a0] sm:$0xf] %vm2703_vm4, %v3338_v19  ;;  %v3339_v24 = vpack.c.bf16 %v2262_v20, %v2262_v20  ;;  %v1589_v25 = vpop.f32.mrb[104].mxu0  ;;  %v1813_v27 = vpop.f32.mrb[104].mxu1 }
 0x200   : > { %2753 = vst.msk [vmem:[%s4250_s9 + $0xc4] sm:$0xf] %vm2703_vm4, %v3283_v23  ;;  %v1871_v28 = vadd.f32 %v1589_v25, %v440_v21  ;;  %v1591_v29 = vpop.f32.mrb[105].mxu0  ;;  %v1927_v30 = vadd.f32 %v1813_v27, %v496_v22  ;;  %v1815_v31 = vpop.f32.mrb[105].mxu1 }
 0x201   : > { %2809 = vst.msk [vmem:[%s4250_s9 + $0x1a4] sm:$0xf] %vm2703_vm4, %v3339_v24  ;;  %v2091_v32 = vld [vmem:[#allocation2 + $0x190] sm:$0xff]  ;;  %v1592_v34 = vpop.f32.mrb[106].mxu0  ;;  %v1816_v35 = vpop.f32.mrb[106].mxu1 }
 0x202   : > { %v2147_v33 = vld [vmem:[#allocation2 + $0x350] sm:$0xff]  ;;  %v2207_v17 = vadd.f32 %v4475_v43, %v2091_v32  ;;  %1981 = vst.msk [vmem:[#allocation2 + $0x1a0] sm:$0xff] %vm278_vm3, %v1871_v28  ;;  %v1872_v37 = vadd.f32 %v1592_v34, %v441_v26  ;;  %v1594_v38 = vpop.f32.mrb[107].mxu0  ;;  %2037 = vst.msk [vmem:[#allocation2 + $0x360] sm:$0xff] %vm278_vm3, %v1927_v30  ;;  %v1817_v39 = vpop.f32.mrb[107].mxu1 }
 0x203   : > { %v2263_v36 = vadd.f32 %v4475_v43, %v2147_v33  ;;  %v2092_v40 = vld [vmem:[#allocation2 + $0x198] sm:$0xff] }
 0x204   : > { %v2148_v41 = vld [vmem:[#allocation2 + $0x358] sm:$0xff]  ;;  %v3284_v42 = vpack.c.bf16 %v2207_v17, %v2207_v17  ;;  %v2208_v44 = vadd.f32 %v4475_v43, %v2092_v40  ;;  %1982 = vst.msk [vmem:[#allocation2 + $0x1a8] sm:$0xff] %vm278_vm3, %v1872_v37 }
 0x205   : > { %v3340_v45 = vpack.c.bf16 %v2263_v36, %v2263_v36  ;;  %v2264_v46 = vadd.f32 %v4475_v43, %v2148_v41 }
 0x206   : > { %2754 = vst.msk [vmem:[%s4250_s9 + $0xc8] sm:$0xf] %vm2703_vm4, %v3284_v42  ;;  %v3285_v48 = vpack.c.bf16 %v2208_v44, %v2208_v44 }
 0x207   : > { %2810 = vst.msk [vmem:[%s4250_s9 + $0x1a8] sm:$0xf] %vm2703_vm4, %v3340_v45  ;;  %v3341_v49 = vpack.c.bf16 %v2264_v46, %v2264_v46  ;;  %v1597_v50 = vpop.f32.mrb[108].mxu0 }
 0x208   : > { %2755 = vst.msk [vmem:[%s4250_s9 + $0xcc] sm:$0xf] %vm2703_vm4, %v3285_v48  ;;  %v1873_v52 = vadd.f32 %v1597_v50, %v442_v47  ;;  %v1599_v53 = vpop.f32.mrb[109].mxu0 }
 0x209   : > { %2811 = vst.msk [vmem:[%s4250_s9 + $0x1ac] sm:$0xf] %vm2703_vm4, %v3341_v49  ;;  %v2093_v54 = vld [vmem:[#allocation2 + $0x1a0] sm:$0xff]  ;;  %v1600_v56 = vpop.f32.mrb[110].mxu0 }
 0x20a   : > { %v2149_v55 = vld [vmem:[#allocation2 + $0x360] sm:$0xff]  ;;  %v2209_v57 = vadd.f32 %v4475_v43, %v2093_v54  ;;  %1983 = vst.msk [vmem:[#allocation2 + $0x1b0] sm:$0xff] %vm278_vm3, %v1873_v52  ;;  %v1874_v59 = vadd.f32 %v1600_v56, %v443_v51  ;;  %v1602_v60 = vpop.f32.mrb[111].mxu0 }
 0x20b   : > { %v2265_v58 = vadd.f32 %v4475_v43, %v2149_v55  ;;  %v2094_v61 = vld [vmem:[#allocation2 + $0x1a8] sm:$0xff] }
 0x20c   : > { %v3286_v62 = vpack.c.bf16 %v2209_v57, %v2209_v57  ;;  %v2210_v63 = vadd.f32 %v4475_v43, %v2094_v61  ;;  %1984 = vst.msk [vmem:[#allocation2 + $0x1b8] sm:$0xff] %vm278_vm3, %v1874_v59 }
 0x20d   : > { %v3342_v0 = vpack.c.bf16 %v2265_v58, %v2265_v58 }
 0x20e   : > { %2756 = vst.msk [vmem:[%s4250_s9 + $0xd0] sm:$0xf] %vm2703_vm4, %v3286_v62  ;;  %v3287_v1 = vpack.c.bf16 %v2210_v63, %v2210_v63 }
 0x20f   : > { %2812 = vst.msk [vmem:[%s4250_s9 + $0x1b0] sm:$0xf] %vm2703_vm4, %v3342_v0 }
 0x210   : > { %2757 = vst.msk [vmem:[%s4250_s9 + $0xd4] sm:$0xf] %vm2703_vm4, %v3287_v1 }
 0x211   : > { %v2095_v2 = vld [vmem:[#allocation2 + $0x1b0] sm:$0xff] }
 0x212   : > { %v2211_v3 = vadd.f32 %v4475_v43, %v2095_v2 }
 0x213   : > { %v2096_v4 = vld [vmem:[#allocation2 + $0x1b8] sm:$0xff] }
 0x214   : > { %v3288_v5 = vpack.c.bf16 %v2211_v3, %v2211_v3  ;;  %v2212_v6 = vadd.f32 %v4475_v43, %v2096_v4 }
 0x216   : > { %2758 = vst.msk [vmem:[%s4250_s9 + $0xd8] sm:$0xf] %vm2703_vm4, %v3288_v5  ;;  %v3289_v7 = vpack.c.bf16 %v2212_v6, %v2212_v6 }
 0x218   : > { %2759 = vst.msk [vmem:[%s4250_s9 + $0xdc] sm:$0xf] %vm2703_vm4, %v3289_v7 }
 0x219 PF: > { %s16_s17 = sadd.s32 1, %s3681_s17   ;;  %s4710_s12 = smov %s3665_s13 }
 0x21a   : > { %p13_p9 = scmp.ge.s32.totalorder %s16_s17, 111   ;;  %s4711_s13 = smov %s3669_s14 }
 0x21b   : > { %s4712_s14 = smov %s3754_s23  ;;  %s4713_s15 = smov %s3677_s16 }
 0x21c   : > { %s4714_s16 = smov %s4716_s19  ;;  %15 = sbr.rel (!%p13_p9) target bundleno = 4 (0x4), region = 86 }
 0x223   :  { %2841 = vsyncpa [#allocation4], 1 }
 0x224   :  { %2843 = vsyncpa [#allocation4 + $0x1], 1 }

</bundles_post_ra>
